<compile_context>
chip_gen: v7x
topology: tpu7x:2x2x1
jax: 0.10.0
libtpu: 0.0.40
codegen_flags: <defaults>
</compile_context>

<pallas_src>
import functools

import jax
import jax.numpy as jnp
from jax.experimental import pallas as pl
from jax.experimental.pallas import tpu as pltpu


def _round_up(x, m):
    return (x + m - 1) // m * m


# ---------------------------------------------------------------------------
# Fused Pallas kernel: embedding gather + all RNN layers + classifier
# ---------------------------------------------------------------------------
def _fused_rnn_kernel(num_layers, seq_len, batch_pad, vocab_pad, hidden,
                      c_pad, k_dims, w_offs, lin_off,
                      ids_ref, emb_ref, w_ref, b_ref, out_ref):
    """Ref layout (all full-array VMEM blocks):

      ids_ref  (T*Bp, 1)           int32  time-major token ids (pad id = 0)
      emb_ref  (Vp, Dp)            bf16   zero-padded embedding table
      w_ref    (sum rows, wmax)    bf16   [wih0|whh0|wih1|whh1|...|lin_w] (transposed)
      b_ref    ((L+1)*8, wmax)     f32    bias l at row 8*l, lin bias at row 8*L
      out_ref  (T*Bp, Cp)          f32    time-major logits
    """
    L, T, Bp, Vp, H, Cp = num_layers, seq_len, batch_pad, vocab_pad, hidden, c_pad

    # ---- embedding gather as a one-hot MXU matmul (exact for a 0/1 LHS) ----
    ids = ids_ref[...]                                            # (T*Bp, 1) i32
    onehot = (ids == jax.lax.broadcasted_iota(jnp.int32, (T * Bp, Vp), 1)
              ).astype(jnp.bfloat16)                              # (T*Bp, Vp)
    x_bf = jnp.dot(onehot, emb_ref[...],
                   preferred_element_type=jnp.float32
                   ).astype(jnp.bfloat16)                         # (T*Bp, Dp)

    # ---- static, 8-aligned slices of the packed weight / bias slabs --------
    wih, whh, bias = [], [], []
    for l in range(L):
        o_i, o_h = w_offs[l]
        k = k_dims[l]
        wih.append(w_ref[o_i:o_i + k, :H])                        # (Kp, H) bf16
        whh.append(w_ref[o_h:o_h + H, :H])                        # (H, H)  bf16
        bias.append(b_ref[8 * l:8 * l + 1, :H])                   # (1, H)  f32
    lin_w = w_ref[lin_off:lin_off + H, :Cp]                       # (H, Cp) bf16
    lin_b = b_ref[8 * L:8 * L + 1, :Cp]                           # (1, Cp) f32

    # ---- layer-0 input projection (+bias) hoisted over all timesteps ------
    pre0 = jnp.dot(x_bf, wih[0],
                   preferred_element_type=jnp.float32) + bias[0]  # (T*Bp, H) f32

    # ---- software wavefront over (layer, time), fully unrolled -------------
    # At wavefront step wv, layer l processes timestep t = wv - l; the per-layer
    # pieces of one wavefront step are mutually independent, so their MXU
    # pushes and tanhs overlap.  Layers are visited in reverse so h_bf[l-1]
    # still holds its timestep-t value when layer l consumes it.
    h_bf = [jnp.zeros((Bp, H), jnp.bfloat16) for _ in range(L)]
    for wv in range(T + L - 1):
        for l in reversed(range(L)):
            t = wv - l
            if not (0 <= t < T):
                continue
            if l == 0:
                pre_t = pre0[t * Bp:(t + 1) * Bp, :]              # static slice
            else:
                pre_t = (jnp.dot(h_bf[l - 1], wih[l],
                                 preferred_element_type=jnp.float32)
                         + bias[l])
            h_new = jnp.tanh(
                pre_t + jnp.dot(h_bf[l], whh[l],
                                preferred_element_type=jnp.float32))
            h_bf[l] = h_new.astype(jnp.bfloat16)
            if l == L - 1:
                # fused classifier, lane-dense store at 8-aligned row offset
                logits_t = (jnp.dot(h_bf[l], lin_w,
                                    preferred_element_type=jnp.float32)
                            + lin_b)
                out_ref[t * Bp:(t + 1) * Bp, :] = logits_t.astype(out_ref.dtype)


def fused_rnn_call(ids, emb_pad, w_all, b_all, *, num_layers, seq_len,
                   batch_pad, hidden, c_pad, k_dims):
    """ids: (T*Bp, 1) int32 -> (T*Bp, Cp) f32 logits (padded, time-major)."""
    m = seq_len * batch_pad
    vocab_pad = emb_pad.shape[0]

    # static row offsets of each matrix inside the packed weight slab
    w_offs, off = [], 0
    for k in k_dims:
        w_offs.append((off, off + k))
        off += k + hidden
    lin_off = off

    kernel = functools.partial(_fused_rnn_kernel, num_layers, seq_len,
                               batch_pad, vocab_pad, hidden, c_pad,
                               tuple(k_dims), tuple(w_offs), lin_off)

    inputs = (ids, emb_pad, w_all, b_all)
    in_specs = [pl.BlockSpec(a.shape, lambda i: (0, 0)) for a in inputs]
    return pl.pallas_call(
        kernel,
        out_shape=jax.ShapeDtypeStruct((m, c_pad), jnp.float32),
        grid_spec=pltpu.PrefetchScalarGridSpec(
            num_scalar_prefetch=0,
            grid=(1,),
            in_specs=in_specs,
            out_specs=pl.BlockSpec((m, c_pad), lambda i: (0, 0)),
        ),
        compiler_params=pltpu.CompilerParams(
            dimension_semantics=("arbitrary",),
        ),
    )(*inputs)


# ---------------------------------------------------------------------------
# Forward wrapper (only id padding / final un-pad happen in XLA)
# ---------------------------------------------------------------------------
@functools.partial(jax.jit, static_argnames=("num_classes",))
def rnn_model_forward(sentence, params, *, num_classes):
    """Replicates RnnModel.forward.

    sentence: (B, T) int32 token ids
    returns : (B, T, num_classes) float32 logits
    """
    B, T = sentence.shape
    Bp = _round_up(B, 8)
    num_layers = len(params["rnn_layers"])
    hidden = params["rnn_layers"][0][1].shape[0]
    c_pad = _round_up(num_classes, 128)
    k_dims = tuple(wih.shape[0] for wih, _, _ in params["rnn_layers"])

    # time-major token ids, batch padded to a full sublane tile (pad id = 0;
    # padded rows never mix with real rows and are sliced off below)
    ids = jnp.zeros((T, Bp), jnp.int32).at[:, :B].set(sentence.T)
    ids = ids.reshape(T * Bp, 1)

    out = fused_rnn_call(ids, params["emb_pad"], params["w_all"],
                         params["b_all"], num_layers=num_layers, seq_len=T,
                         batch_pad=Bp, hidden=hidden, c_pad=c_pad,
                         k_dims=k_dims)                           # (T*Bp, Cp)
    out = out.reshape(T, Bp, c_pad)[:, :B, :num_classes]          # (T, B, C)
    return jnp.transpose(out, (1, 0, 2))                          # (B, T, C)


# ---------------------------------------------------------------------------
# Deterministic synthetic parameters (matching the module's shapes)
# ---------------------------------------------------------------------------
def make_params(key, vocab_size, embedding_dim, hidden_size, num_classes,
                num_layers):
    keys = jax.random.split(key, 3 + 4 * num_layers)
    k = iter(keys)

    embedding = jax.random.normal(next(k), (vocab_size, embedding_dim),
                                  jnp.float32) / 10.0

    scale = 1.0 / jnp.sqrt(hidden_size)
    rnn_layers = []
    in_dim = embedding_dim
    for _ in range(num_layers):
        w_ih = jax.random.uniform(next(k), (hidden_size, in_dim),
                                  jnp.float32, -scale, scale)
        w_hh = jax.random.uniform(next(k), (hidden_size, hidden_size),
                                  jnp.float32, -scale, scale)
        b_ih = jax.random.uniform(next(k), (hidden_size,), jnp.float32,
                                  -scale, scale)
        b_hh = jax.random.uniform(next(k), (hidden_size,), jnp.float32,
                                  -scale, scale)
        k_pad = _round_up(in_dim, 128)
        wih_t = jnp.zeros((k_pad, hidden_size),
                          jnp.float32).at[:in_dim, :].set(w_ih.T)
        rnn_layers.append((
            wih_t.astype(jnp.bfloat16),                        # (Kp, H) bf16
            w_hh.T.astype(jnp.bfloat16),                       # (H, H)  bf16
            (b_ih + b_hh).reshape(1, -1).astype(jnp.float32),  # (1, H)  f32
        ))
        in_dim = hidden_size

    lin_w = jax.random.uniform(next(k), (num_classes, hidden_size),
                               jnp.float32, -scale, scale)
    lin_b = jax.random.uniform(next(k), (num_classes,), jnp.float32,
                               -scale, scale)
    c_pad = _round_up(num_classes, 128)
    lin_w_t = jnp.zeros((hidden_size, c_pad),
                        jnp.float32).at[:, :num_classes].set(lin_w.T)
    lin_w_t = lin_w_t.astype(jnp.bfloat16)                     # (H, Cp) bf16
    lin_b_p = jnp.zeros((1, c_pad), jnp.float32).at[0, :num_classes].set(lin_b)

    # ---- packed kernel-side forms (few big DMAs instead of many small) ----
    wmax = max(hidden_size, c_pad)

    def _padw(w):
        return jnp.pad(w, ((0, 0), (0, wmax - w.shape[1])))

    w_rows = []
    for wih_t, whh_t, _ in rnn_layers:
        w_rows += [_padw(wih_t), _padw(whh_t)]
    w_rows.append(_padw(lin_w_t))
    w_all = jnp.concatenate(w_rows, axis=0)                    # (rows, wmax) bf16

    b_rows = []
    for _, _, b in rnn_layers:
        b_rows.append(jnp.zeros((8, wmax), jnp.float32)
                      .at[0, :hidden_size].set(b[0]))
    b_rows.append(jnp.zeros((8, wmax), jnp.float32)
                  .at[0, :c_pad].set(lin_b_p[0]))
    b_all = jnp.concatenate(b_rows, axis=0)                    # ((L+1)*8, wmax) f32

    v_pad = _round_up(vocab_size, 128)
    d_pad = _round_up(embedding_dim, 128)
    emb_pad = (jnp.zeros((v_pad, d_pad), jnp.float32)
               .at[:vocab_size, :embedding_dim].set(embedding)
               .astype(jnp.bfloat16))                          # (Vp, Dp) bf16

    return {
        "embedding": embedding,        # f32 unpadded (reference)
        "rnn_layers": rnn_layers,      # bf16 padded/transposed (reference + shapes)
        "lin_w_t": lin_w_t,            # (reference)
        "lin_b": lin_b_p,              # (reference)
        "emb_pad": emb_pad,            # kernel
        "w_all": w_all,                # kernel
        "b_all": b_all,                # kernel
    }


# ---------------------------------------------------------------------------
# Pure-JAX reference (same math / same bf16 quantization, no Pallas)
# ---------------------------------------------------------------------------
def reference_forward(sentence, params, num_classes):
    emb = jnp.take(params["embedding"], sentence, axis=0)      # (B, T, D)
    x = jnp.transpose(emb, (1, 0, 2)).astype(jnp.float32)      # (T, B, D)
    T, B, _ = x.shape
    for wih_t, whh_t, b in params["rnn_layers"]:
        K, H = wih_t.shape
        x = jnp.pad(x, ((0, 0), (0, 0), (0, K - x.shape[2])))
        pre = jnp.einsum("tbd,dh->tbh", x.astype(jnp.bfloat16), wih_t,
                         preferred_element_type=jnp.float32) + b
        h = jnp.zeros((B, H), jnp.float32)
        outs = []
        for t in range(T):
            h = jnp.tanh(pre[t] + jnp.dot(h.astype(jnp.bfloat16), whh_t,
                                          preferred_element_type=jnp.float32))
            outs.append(h)
        x = jnp.stack(outs, axis=0)                            # (T, B, H)
    logits = jnp.einsum("tbh,hc->tbc", x.astype(jnp.bfloat16),
                        params["lin_w_t"],
                        preferred_element_type=jnp.float32) + params["lin_b"]
    logits = logits[:, :, :num_classes]
    return jnp.transpose(logits, (1, 0, 2))                    # (B, T, C)


# ---------------------------------------------------------------------------
if __name__ == "__main__":
    EMBEDDING_DIM = 100
    HIDDEN_SIZE = 128
    NUM_CLASSES = 20
    NUM_LAYERS = 2
    VOCAB_SIZE = 50 + 2          # len(vocabulary) + 2
    BATCH = 2
    SEQ = 8

    root = jax.random.PRNGKey(0)
    pkey, dkey = jax.random.split(root)

    params = make_params(pkey, VOCAB_SIZE, EMBEDDING_DIM, HIDDEN_SIZE,
                         NUM_CLASSES, NUM_LAYERS)

    sentence = jax.random.randint(dkey, (BATCH, SEQ), 0, VOCAB_SIZE,
                                  dtype=jnp.int32)

    logits = rnn_model_forward(sentence, params, num_classes=NUM_CLASSES)
    logits = jax.block_until_ready(logits)

    assert logits.shape == (BATCH, SEQ, NUM_CLASSES), logits.shape

    ref = reference_forward(sentence, params, NUM_CLASSES)
    max_err = float(jnp.max(jnp.abs(logits - ref)))
    assert jnp.allclose(logits, ref, atol=2e-3, rtol=2e-3), max_err

    print("KERNEL_OK")
</pallas_src>

<mosaic_0001>
module attributes {stable_mosaic.version = 11 : i64} {
  func.func @_fused_rnn_kernel(%arg0: i32, %arg1: memref<64x1xi32, #tpu.memory_space<vmem>>, %arg2: memref<128x128xbf16, #tpu.memory_space<vmem>>, %arg3: memref<640x128xbf16, #tpu.memory_space<vmem>>, %arg4: memref<24x128xf32, #tpu.memory_space<vmem>>, %arg5: memref<64x128xf32, #tpu.memory_space<vmem>>) attributes {dimension_semantics = [#tpu.dimension_semantics<arbitrary>], iteration_bounds = array<i64: 1>, scalar_prefetch = 0 : i64, scratch_operands = 0 : i64, tpu.core_type = #tpu.core_type<tc>, window_params = [{pipeline_mode = #tpu.pipeline_mode<synchronous>, transform_indices = @transform_0, window_bounds = array<i64: 64, 1>}, {pipeline_mode = #tpu.pipeline_mode<synchronous>, transform_indices = @transform_1, window_bounds = array<i64: 128, 128>}, {pipeline_mode = #tpu.pipeline_mode<synchronous>, transform_indices = @transform_2, window_bounds = array<i64: 640, 128>}, {pipeline_mode = #tpu.pipeline_mode<synchronous>, transform_indices = @transform_3, window_bounds = array<i64: 24, 128>}, {pipeline_mode = #tpu.pipeline_mode<synchronous>, transform_indices = @transform_4, window_bounds = array<i64: 64, 128>}]} {
    %c0 = arith.constant 0 : index
    %c0_0 = arith.constant 0 : index
    %0 = vector.load %arg1[%c0, %c0_0] : memref<64x1xi32, #tpu.memory_space<vmem>>, vector<64x1xi32>
    %1 = tpu.iota {dimensions = array<i32: 1>} : vector<64x128xi32>
    %2 = vector.broadcast %0 : vector<64x1xi32> to vector<64x128xi32>
    %3 = arith.cmpi eq, %2, %1 : vector<64x128xi32>
    %4 = arith.extui %3 : vector<64x128xi1> to vector<64x128xi32>
    %5 = arith.sitofp %4 : vector<64x128xi32> to vector<64x128xf32>
    %6 = arith.truncf %5 : vector<64x128xf32> to vector<64x128xbf16>
    %c0_1 = arith.constant 0 : index
    %c0_2 = arith.constant 0 : index
    %7 = vector.load %arg2[%c0_1, %c0_2] : memref<128x128xbf16, #tpu.memory_space<vmem>>, vector<128x128xbf16>
    %cst = arith.constant dense<0.000000e+00> : vector<64x128xf32>
    %8 = tpu.matmul %6, %7, %cst {dimension_numbers = #tpu.dot_dimension_numbers<[1], [0], [0], [1], [0, 0, 1, 1], [], []>} : vector<64x128xbf16>, vector<128x128xbf16>, vector<64x128xf32> -> vector<64x128xf32>
    %9 = arith.truncf %8 : vector<64x128xf32> to vector<64x128xbf16>
    %c0_3 = arith.constant 0 : index
    %c0_4 = arith.constant 0 : index
    %10 = vector.load %arg3[%c0_3, %c0_4] : memref<640x128xbf16, #tpu.memory_space<vmem>>, vector<128x128xbf16>
    %c128 = arith.constant 128 : index
    %c0_5 = arith.constant 0 : index
    %11 = vector.load %arg3[%c128, %c0_5] : memref<640x128xbf16, #tpu.memory_space<vmem>>, vector<128x128xbf16>
    %c0_6 = arith.constant 0 : index
    %c0_7 = arith.constant 0 : index
    %12 = vector.load %arg4[%c0_6, %c0_7] : memref<24x128xf32, #tpu.memory_space<vmem>>, vector<1x128xf32>
    %c256 = arith.constant 256 : index
    %c0_8 = arith.constant 0 : index
    %13 = vector.load %arg3[%c256, %c0_8] : memref<640x128xbf16, #tpu.memory_space<vmem>>, vector<128x128xbf16>
    %c384 = arith.constant 384 : index
    %c0_9 = arith.constant 0 : index
    %14 = vector.load %arg3[%c384, %c0_9] : memref<640x128xbf16, #tpu.memory_space<vmem>>, vector<128x128xbf16>
    %c8 = arith.constant 8 : index
    %c0_10 = arith.constant 0 : index
    %15 = vector.load %arg4[%c8, %c0_10] : memref<24x128xf32, #tpu.memory_space<vmem>>, vector<1x128xf32>
    %c512 = arith.constant 512 : index
    %c0_11 = arith.constant 0 : index
    %16 = vector.load %arg3[%c512, %c0_11] : memref<640x128xbf16, #tpu.memory_space<vmem>>, vector<128x128xbf16>
    %c16 = arith.constant 16 : index
    %c0_12 = arith.constant 0 : index
    %17 = vector.load %arg4[%c16, %c0_12] : memref<24x128xf32, #tpu.memory_space<vmem>>, vector<1x128xf32>
    %cst_13 = arith.constant dense<0.000000e+00> : vector<64x128xf32>
    %18 = tpu.matmul %9, %10, %cst_13 {dimension_numbers = #tpu.dot_dimension_numbers<[1], [0], [0], [1], [0, 0, 1, 1], [], []>} : vector<64x128xbf16>, vector<128x128xbf16>, vector<64x128xf32> -> vector<64x128xf32>
    %19 = vector.broadcast %12 : vector<1x128xf32> to vector<64x128xf32>
    %20 = arith.addf %18, %19 : vector<64x128xf32>
    %cst_14 = arith.constant 0.000000e+00 : bf16
    %21 = vector.broadcast %cst_14 : bf16 to vector<8x128xbf16>
    %cst_15 = arith.constant 0.000000e+00 : bf16
    %22 = vector.broadcast %cst_15 : bf16 to vector<8x128xbf16>
    %23 = vector.extract_strided_slice %20 {offsets = [0, 0], sizes = [8, 128], strides = [1, 1]} : vector<64x128xf32> to vector<8x128xf32>
    %cst_16 = arith.constant dense<0.000000e+00> : vector<8x128xf32>
    %24 = tpu.matmul %21, %11, %cst_16 {dimension_numbers = #tpu.dot_dimension_numbers<[1], [0], [0], [1], [0, 0, 1, 1], [], []>} : vector<8x128xbf16>, vector<128x128xbf16>, vector<8x128xf32> -> vector<8x128xf32>
    %25 = arith.addf %23, %24 : vector<8x128xf32>
    %26 = math.tanh %25 : vector<8x128xf32>
    %27 = arith.truncf %26 : vector<8x128xf32> to vector<8x128xbf16>
    %cst_17 = arith.constant dense<0.000000e+00> : vector<8x128xf32>
    %28 = tpu.matmul %27, %13, %cst_17 {dimension_numbers = #tpu.dot_dimension_numbers<[1], [0], [0], [1], [0, 0, 1, 1], [], []>} : vector<8x128xbf16>, vector<128x128xbf16>, vector<8x128xf32> -> vector<8x128xf32>
    %29 = vector.broadcast %15 : vector<1x128xf32> to vector<8x128xf32>
    %30 = arith.addf %28, %29 : vector<8x128xf32>
    %cst_18 = arith.constant dense<0.000000e+00> : vector<8x128xf32>
    %31 = tpu.matmul %22, %14, %cst_18 {dimension_numbers = #tpu.dot_dimension_numbers<[1], [0], [0], [1], [0, 0, 1, 1], [], []>} : vector<8x128xbf16>, vector<128x128xbf16>, vector<8x128xf32> -> vector<8x128xf32>
    %32 = arith.addf %30, %31 : vector<8x128xf32>
    %33 = math.tanh %32 : vector<8x128xf32>
    %34 = arith.truncf %33 : vector<8x128xf32> to vector<8x128xbf16>
    %cst_19 = arith.constant dense<0.000000e+00> : vector<8x128xf32>
    %35 = tpu.matmul %34, %16, %cst_19 {dimension_numbers = #tpu.dot_dimension_numbers<[1], [0], [0], [1], [0, 0, 1, 1], [], []>} : vector<8x128xbf16>, vector<128x128xbf16>, vector<8x128xf32> -> vector<8x128xf32>
    %36 = vector.broadcast %17 : vector<1x128xf32> to vector<8x128xf32>
    %37 = arith.addf %35, %36 : vector<8x128xf32>
    %c0_20 = arith.constant 0 : index
    %c0_21 = arith.constant 0 : index
    %38 = vector.load %arg5[%c0_20, %c0_21] : memref<64x128xf32, #tpu.memory_space<vmem>>, vector<8x128xf32>
    tpu.vector_store %arg5[%c0_20, %c0_21], %37 {strides = array<i32>} : memref<64x128xf32, #tpu.memory_space<vmem>>, vector<8x128xf32>,
    %39 = vector.extract_strided_slice %20 {offsets = [8, 0], sizes = [8, 128], strides = [1, 1]} : vector<64x128xf32> to vector<8x128xf32>
    %cst_22 = arith.constant dense<0.000000e+00> : vector<8x128xf32>
    %40 = tpu.matmul %27, %11, %cst_22 {dimension_numbers = #tpu.dot_dimension_numbers<[1], [0], [0], [1], [0, 0, 1, 1], [], []>} : vector<8x128xbf16>, vector<128x128xbf16>, vector<8x128xf32> -> vector<8x128xf32>
    %41 = arith.addf %39, %40 : vector<8x128xf32>
    %42 = math.tanh %41 : vector<8x128xf32>
    %43 = arith.truncf %42 : vector<8x128xf32> to vector<8x128xbf16>
    %cst_23 = arith.constant dense<0.000000e+00> : vector<8x128xf32>
    %44 = tpu.matmul %43, %13, %cst_23 {dimension_numbers = #tpu.dot_dimension_numbers<[1], [0], [0], [1], [0, 0, 1, 1], [], []>} : vector<8x128xbf16>, vector<128x128xbf16>, vector<8x128xf32> -> vector<8x128xf32>
    %45 = vector.broadcast %15 : vector<1x128xf32> to vector<8x128xf32>
    %46 = arith.addf %44, %45 : vector<8x128xf32>
    %cst_24 = arith.constant dense<0.000000e+00> : vector<8x128xf32>
    %47 = tpu.matmul %34, %14, %cst_24 {dimension_numbers = #tpu.dot_dimension_numbers<[1], [0], [0], [1], [0, 0, 1, 1], [], []>} : vector<8x128xbf16>, vector<128x128xbf16>, vector<8x128xf32> -> vector<8x128xf32>
    %48 = arith.addf %46, %47 : vector<8x128xf32>
    %49 = math.tanh %48 : vector<8x128xf32>
    %50 = arith.truncf %49 : vector<8x128xf32> to vector<8x128xbf16>
    %cst_25 = arith.constant dense<0.000000e+00> : vector<8x128xf32>
    %51 = tpu.matmul %50, %16, %cst_25 {dimension_numbers = #tpu.dot_dimension_numbers<[1], [0], [0], [1], [0, 0, 1, 1], [], []>} : vector<8x128xbf16>, vector<128x128xbf16>, vector<8x128xf32> -> vector<8x128xf32>
    %52 = vector.broadcast %17 : vector<1x128xf32> to vector<8x128xf32>
    %53 = arith.addf %51, %52 : vector<8x128xf32>
    %c8_26 = arith.constant 8 : index
    %c0_27 = arith.constant 0 : index
    %54 = vector.load %arg5[%c8_26, %c0_27] : memref<64x128xf32, #tpu.memory_space<vmem>>, vector<8x128xf32>
    tpu.vector_store %arg5[%c8_26, %c0_27], %53 {strides = array<i32>} : memref<64x128xf32, #tpu.memory_space<vmem>>, vector<8x128xf32>,
    %55 = vector.extract_strided_slice %20 {offsets = [16, 0], sizes = [8, 128], strides = [1, 1]} : vector<64x128xf32> to vector<8x128xf32>
    %cst_28 = arith.constant dense<0.000000e+00> : vector<8x128xf32>
    %56 = tpu.matmul %43, %11, %cst_28 {dimension_numbers = #tpu.dot_dimension_numbers<[1], [0], [0], [1], [0, 0, 1, 1], [], []>} : vector<8x128xbf16>, vector<128x128xbf16>, vector<8x128xf32> -> vector<8x128xf32>
    %57 = arith.addf %55, %56 : vector<8x128xf32>
    %58 = math.tanh %57 : vector<8x128xf32>
    %59 = arith.truncf %58 : vector<8x128xf32> to vector<8x128xbf16>
    %cst_29 = arith.constant dense<0.000000e+00> : vector<8x128xf32>
    %60 = tpu.matmul %59, %13, %cst_29 {dimension_numbers = #tpu.dot_dimension_numbers<[1], [0], [0], [1], [0, 0, 1, 1], [], []>} : vector<8x128xbf16>, vector<128x128xbf16>, vector<8x128xf32> -> vector<8x128xf32>
    %61 = vector.broadcast %15 : vector<1x128xf32> to vector<8x128xf32>
    %62 = arith.addf %60, %61 : vector<8x128xf32>
    %cst_30 = arith.constant dense<0.000000e+00> : vector<8x128xf32>
    %63 = tpu.matmul %50, %14, %cst_30 {dimension_numbers = #tpu.dot_dimension_numbers<[1], [0], [0], [1], [0, 0, 1, 1], [], []>} : vector<8x128xbf16>, vector<128x128xbf16>, vector<8x128xf32> -> vector<8x128xf32>
    %64 = arith.addf %62, %63 : vector<8x128xf32>
    %65 = math.tanh %64 : vector<8x128xf32>
    %66 = arith.truncf %65 : vector<8x128xf32> to vector<8x128xbf16>
    %cst_31 = arith.constant dense<0.000000e+00> : vector<8x128xf32>
    %67 = tpu.matmul %66, %16, %cst_31 {dimension_numbers = #tpu.dot_dimension_numbers<[1], [0], [0], [1], [0, 0, 1, 1], [], []>} : vector<8x128xbf16>, vector<128x128xbf16>, vector<8x128xf32> -> vector<8x128xf32>
    %68 = vector.broadcast %17 : vector<1x128xf32> to vector<8x128xf32>
    %69 = arith.addf %67, %68 : vector<8x128xf32>
    %c16_32 = arith.constant 16 : index
    %c0_33 = arith.constant 0 : index
    %70 = vector.load %arg5[%c16_32, %c0_33] : memref<64x128xf32, #tpu.memory_space<vmem>>, vector<8x128xf32>
    tpu.vector_store %arg5[%c16_32, %c0_33], %69 {strides = array<i32>} : memref<64x128xf32, #tpu.memory_space<vmem>>, vector<8x128xf32>,
    %71 = vector.extract_strided_slice %20 {offsets = [24, 0], sizes = [8, 128], strides = [1, 1]} : vector<64x128xf32> to vector<8x128xf32>
    %cst_34 = arith.constant dense<0.000000e+00> : vector<8x128xf32>
    %72 = tpu.matmul %59, %11, %cst_34 {dimension_numbers = #tpu.dot_dimension_numbers<[1], [0], [0], [1], [0, 0, 1, 1], [], []>} : vector<8x128xbf16>, vector<128x128xbf16>, vector<8x128xf32> -> vector<8x128xf32>
    %73 = arith.addf %71, %72 : vector<8x128xf32>
    %74 = math.tanh %73 : vector<8x128xf32>
    %75 = arith.truncf %74 : vector<8x128xf32> to vector<8x128xbf16>
    %cst_35 = arith.constant dense<0.000000e+00> : vector<8x128xf32>
    %76 = tpu.matmul %75, %13, %cst_35 {dimension_numbers = #tpu.dot_dimension_numbers<[1], [0], [0], [1], [0, 0, 1, 1], [], []>} : vector<8x128xbf16>, vector<128x128xbf16>, vector<8x128xf32> -> vector<8x128xf32>
    %77 = vector.broadcast %15 : vector<1x128xf32> to vector<8x128xf32>
    %78 = arith.addf %76, %77 : vector<8x128xf32>
    %cst_36 = arith.constant dense<0.000000e+00> : vector<8x128xf32>
    %79 = tpu.matmul %66, %14, %cst_36 {dimension_numbers = #tpu.dot_dimension_numbers<[1], [0], [0], [1], [0, 0, 1, 1], [], []>} : vector<8x128xbf16>, vector<128x128xbf16>, vector<8x128xf32> -> vector<8x128xf32>
    %80 = arith.addf %78, %79 : vector<8x128xf32>
    %81 = math.tanh %80 : vector<8x128xf32>
    %82 = arith.truncf %81 : vector<8x128xf32> to vector<8x128xbf16>
    %cst_37 = arith.constant dense<0.000000e+00> : vector<8x128xf32>
    %83 = tpu.matmul %82, %16, %cst_37 {dimension_numbers = #tpu.dot_dimension_numbers<[1], [0], [0], [1], [0, 0, 1, 1], [], []>} : vector<8x128xbf16>, vector<128x128xbf16>, vector<8x128xf32> -> vector<8x128xf32>
    %84 = vector.broadcast %17 : vector<1x128xf32> to vector<8x128xf32>
    %85 = arith.addf %83, %84 : vector<8x128xf32>
    %c24 = arith.constant 24 : index
    %c0_38 = arith.constant 0 : index
    %86 = vector.load %arg5[%c24, %c0_38] : memref<64x128xf32, #tpu.memory_space<vmem>>, vector<8x128xf32>
    tpu.vector_store %arg5[%c24, %c0_38], %85 {strides = array<i32>} : memref<64x128xf32, #tpu.memory_space<vmem>>, vector<8x128xf32>,
    %87 = vector.extract_strided_slice %20 {offsets = [32, 0], sizes = [8, 128], strides = [1, 1]} : vector<64x128xf32> to vector<8x128xf32>
    %cst_39 = arith.constant dense<0.000000e+00> : vector<8x128xf32>
    %88 = tpu.matmul %75, %11, %cst_39 {dimension_numbers = #tpu.dot_dimension_numbers<[1], [0], [0], [1], [0, 0, 1, 1], [], []>} : vector<8x128xbf16>, vector<128x128xbf16>, vector<8x128xf32> -> vector<8x128xf32>
    %89 = arith.addf %87, %88 : vector<8x128xf32>
    %90 = math.tanh %89 : vector<8x128xf32>
    %91 = arith.truncf %90 : vector<8x128xf32> to vector<8x128xbf16>
    %cst_40 = arith.constant dense<0.000000e+00> : vector<8x128xf32>
    %92 = tpu.matmul %91, %13, %cst_40 {dimension_numbers = #tpu.dot_dimension_numbers<[1], [0], [0], [1], [0, 0, 1, 1], [], []>} : vector<8x128xbf16>, vector<128x128xbf16>, vector<8x128xf32> -> vector<8x128xf32>
    %93 = vector.broadcast %15 : vector<1x128xf32> to vector<8x128xf32>
    %94 = arith.addf %92, %93 : vector<8x128xf32>
    %cst_41 = arith.constant dense<0.000000e+00> : vector<8x128xf32>
    %95 = tpu.matmul %82, %14, %cst_41 {dimension_numbers = #tpu.dot_dimension_numbers<[1], [0], [0], [1], [0, 0, 1, 1], [], []>} : vector<8x128xbf16>, vector<128x128xbf16>, vector<8x128xf32> -> vector<8x128xf32>
    %96 = arith.addf %94, %95 : vector<8x128xf32>
    %97 = math.tanh %96 : vector<8x128xf32>
    %98 = arith.truncf %97 : vector<8x128xf32> to vector<8x128xbf16>
    %cst_42 = arith.constant dense<0.000000e+00> : vector<8x128xf32>
    %99 = tpu.matmul %98, %16, %cst_42 {dimension_numbers = #tpu.dot_dimension_numbers<[1], [0], [0], [1], [0, 0, 1, 1], [], []>} : vector<8x128xbf16>, vector<128x128xbf16>, vector<8x128xf32> -> vector<8x128xf32>
    %100 = vector.broadcast %17 : vector<1x128xf32> to vector<8x128xf32>
    %101 = arith.addf %99, %100 : vector<8x128xf32>
    %c32 = arith.constant 32 : index
    %c0_43 = arith.constant 0 : index
    %102 = vector.load %arg5[%c32, %c0_43] : memref<64x128xf32, #tpu.memory_space<vmem>>, vector<8x128xf32>
    tpu.vector_store %arg5[%c32, %c0_43], %101 {strides = array<i32>} : memref<64x128xf32, #tpu.memory_space<vmem>>, vector<8x128xf32>,
    %103 = vector.extract_strided_slice %20 {offsets = [40, 0], sizes = [8, 128], strides = [1, 1]} : vector<64x128xf32> to vector<8x128xf32>
    %cst_44 = arith.constant dense<0.000000e+00> : vector<8x128xf32>
    %104 = tpu.matmul %91, %11, %cst_44 {dimension_numbers = #tpu.dot_dimension_numbers<[1], [0], [0], [1], [0, 0, 1, 1], [], []>} : vector<8x128xbf16>, vector<128x128xbf16>, vector<8x128xf32> -> vector<8x128xf32>
    %105 = arith.addf %103, %104 : vector<8x128xf32>
    %106 = math.tanh %105 : vector<8x128xf32>
    %107 = arith.truncf %106 : vector<8x128xf32> to vector<8x128xbf16>
    %cst_45 = arith.constant dense<0.000000e+00> : vector<8x128xf32>
    %108 = tpu.matmul %107, %13, %cst_45 {dimension_numbers = #tpu.dot_dimension_numbers<[1], [0], [0], [1], [0, 0, 1, 1], [], []>} : vector<8x128xbf16>, vector<128x128xbf16>, vector<8x128xf32> -> vector<8x128xf32>
    %109 = vector.broadcast %15 : vector<1x128xf32> to vector<8x128xf32>
    %110 = arith.addf %108, %109 : vector<8x128xf32>
    %cst_46 = arith.constant dense<0.000000e+00> : vector<8x128xf32>
    %111 = tpu.matmul %98, %14, %cst_46 {dimension_numbers = #tpu.dot_dimension_numbers<[1], [0], [0], [1], [0, 0, 1, 1], [], []>} : vector<8x128xbf16>, vector<128x128xbf16>, vector<8x128xf32> -> vector<8x128xf32>
    %112 = arith.addf %110, %111 : vector<8x128xf32>
    %113 = math.tanh %112 : vector<8x128xf32>
    %114 = arith.truncf %113 : vector<8x128xf32> to vector<8x128xbf16>
    %cst_47 = arith.constant dense<0.000000e+00> : vector<8x128xf32>
    %115 = tpu.matmul %114, %16, %cst_47 {dimension_numbers = #tpu.dot_dimension_numbers<[1], [0], [0], [1], [0, 0, 1, 1], [], []>} : vector<8x128xbf16>, vector<128x128xbf16>, vector<8x128xf32> -> vector<8x128xf32>
    %116 = vector.broadcast %17 : vector<1x128xf32> to vector<8x128xf32>
    %117 = arith.addf %115, %116 : vector<8x128xf32>
    %c40 = arith.constant 40 : index
    %c0_48 = arith.constant 0 : index
    %118 = vector.load %arg5[%c40, %c0_48] : memref<64x128xf32, #tpu.memory_space<vmem>>, vector<8x128xf32>
    tpu.vector_store %arg5[%c40, %c0_48], %117 {strides = array<i32>} : memref<64x128xf32, #tpu.memory_space<vmem>>, vector<8x128xf32>,
    %119 = vector.extract_strided_slice %20 {offsets = [48, 0], sizes = [8, 128], strides = [1, 1]} : vector<64x128xf32> to vector<8x128xf32>
    %cst_49 = arith.constant dense<0.000000e+00> : vector<8x128xf32>
    %120 = tpu.matmul %107, %11, %cst_49 {dimension_numbers = #tpu.dot_dimension_numbers<[1], [0], [0], [1], [0, 0, 1, 1], [], []>} : vector<8x128xbf16>, vector<128x128xbf16>, vector<8x128xf32> -> vector<8x128xf32>
    %121 = arith.addf %119, %120 : vector<8x128xf32>
    %122 = math.tanh %121 : vector<8x128xf32>
    %123 = arith.truncf %122 : vector<8x128xf32> to vector<8x128xbf16>
    %cst_50 = arith.constant dense<0.000000e+00> : vector<8x128xf32>
    %124 = tpu.matmul %123, %13, %cst_50 {dimension_numbers = #tpu.dot_dimension_numbers<[1], [0], [0], [1], [0, 0, 1, 1], [], []>} : vector<8x128xbf16>, vector<128x128xbf16>, vector<8x128xf32> -> vector<8x128xf32>
    %125 = vector.broadcast %15 : vector<1x128xf32> to vector<8x128xf32>
    %126 = arith.addf %124, %125 : vector<8x128xf32>
    %cst_51 = arith.constant dense<0.000000e+00> : vector<8x128xf32>
    %127 = tpu.matmul %114, %14, %cst_51 {dimension_numbers = #tpu.dot_dimension_numbers<[1], [0], [0], [1], [0, 0, 1, 1], [], []>} : vector<8x128xbf16>, vector<128x128xbf16>, vector<8x128xf32> -> vector<8x128xf32>
    %128 = arith.addf %126, %127 : vector<8x128xf32>
    %129 = math.tanh %128 : vector<8x128xf32>
    %130 = arith.truncf %129 : vector<8x128xf32> to vector<8x128xbf16>
    %cst_52 = arith.constant dense<0.000000e+00> : vector<8x128xf32>
    %131 = tpu.matmul %130, %16, %cst_52 {dimension_numbers = #tpu.dot_dimension_numbers<[1], [0], [0], [1], [0, 0, 1, 1], [], []>} : vector<8x128xbf16>, vector<128x128xbf16>, vector<8x128xf32> -> vector<8x128xf32>
    %132 = vector.broadcast %17 : vector<1x128xf32> to vector<8x128xf32>
    %133 = arith.addf %131, %132 : vector<8x128xf32>
    %c48 = arith.constant 48 : index
    %c0_53 = arith.constant 0 : index
    %134 = vector.load %arg5[%c48, %c0_53] : memref<64x128xf32, #tpu.memory_space<vmem>>, vector<8x128xf32>
    tpu.vector_store %arg5[%c48, %c0_53], %133 {strides = array<i32>} : memref<64x128xf32, #tpu.memory_space<vmem>>, vector<8x128xf32>,
    %135 = vector.extract_strided_slice %20 {offsets = [56, 0], sizes = [8, 128], strides = [1, 1]} : vector<64x128xf32> to vector<8x128xf32>
    %cst_54 = arith.constant dense<0.000000e+00> : vector<8x128xf32>
    %136 = tpu.matmul %123, %11, %cst_54 {dimension_numbers = #tpu.dot_dimension_numbers<[1], [0], [0], [1], [0, 0, 1, 1], [], []>} : vector<8x128xbf16>, vector<128x128xbf16>, vector<8x128xf32> -> vector<8x128xf32>
    %137 = arith.addf %135, %136 : vector<8x128xf32>
    %138 = math.tanh %137 : vector<8x128xf32>
    %139 = arith.truncf %138 : vector<8x128xf32> to vector<8x128xbf16>
    %cst_55 = arith.constant dense<0.000000e+00> : vector<8x128xf32>
    %140 = tpu.matmul %139, %13, %cst_55 {dimension_numbers = #tpu.dot_dimension_numbers<[1], [0], [0], [1], [0, 0, 1, 1], [], []>} : vector<8x128xbf16>, vector<128x128xbf16>, vector<8x128xf32> -> vector<8x128xf32>
    %141 = vector.broadcast %15 : vector<1x128xf32> to vector<8x128xf32>
    %142 = arith.addf %140, %141 : vector<8x128xf32>
    %cst_56 = arith.constant dense<0.000000e+00> : vector<8x128xf32>
    %143 = tpu.matmul %130, %14, %cst_56 {dimension_numbers = #tpu.dot_dimension_numbers<[1], [0], [0], [1], [0, 0, 1, 1], [], []>} : vector<8x128xbf16>, vector<128x128xbf16>, vector<8x128xf32> -> vector<8x128xf32>
    %144 = arith.addf %142, %143 : vector<8x128xf32>
    %145 = math.tanh %144 : vector<8x128xf32>
    %146 = arith.truncf %145 : vector<8x128xf32> to vector<8x128xbf16>
    %cst_57 = arith.constant dense<0.000000e+00> : vector<8x128xf32>
    %147 = tpu.matmul %146, %16, %cst_57 {dimension_numbers = #tpu.dot_dimension_numbers<[1], [0], [0], [1], [0, 0, 1, 1], [], []>} : vector<8x128xbf16>, vector<128x128xbf16>, vector<8x128xf32> -> vector<8x128xf32>
    %148 = vector.broadcast %17 : vector<1x128xf32> to vector<8x128xf32>
    %149 = arith.addf %147, %148 : vector<8x128xf32>
    %c56 = arith.constant 56 : index
    %c0_58 = arith.constant 0 : index
    %150 = vector.load %arg5[%c56, %c0_58] : memref<64x128xf32, #tpu.memory_space<vmem>>, vector<8x128xf32>
    tpu.vector_store %arg5[%c56, %c0_58], %149 {strides = array<i32>} : memref<64x128xf32, #tpu.memory_space<vmem>>, vector<8x128xf32>,
    return
  }
  func.func @transform_0(%arg0: i32) -> (i32, i32) {
    %c0_i32 = arith.constant 0 : i32
    %c0_i32_0 = arith.constant 0 : i32
    %c0_i32_1 = arith.constant 0 : i32
    return %c0_i32, %c0_i32_0 : i32, i32
  }
  func.func @transform_1(%arg0: i32) -> (i32, i32) {
    %c0_i32 = arith.constant 0 : i32
    %c0_i32_0 = arith.constant 0 : i32
    %c0_i32_1 = arith.constant 0 : i32
    return %c0_i32, %c0_i32_0 : i32, i32
  }
  func.func @transform_2(%arg0: i32) -> (i32, i32) {
    %c0_i32 = arith.constant 0 : i32
    %c0_i32_0 = arith.constant 0 : i32
    %c0_i32_1 = arith.constant 0 : i32
    return %c0_i32, %c0_i32_0 : i32, i32
  }
  func.func @transform_3(%arg0: i32) -> (i32, i32) {
    %c0_i32 = arith.constant 0 : i32
    %c0_i32_0 = arith.constant 0 : i32
    %c0_i32_1 = arith.constant 0 : i32
    return %c0_i32, %c0_i32_0 : i32, i32
  }
  func.func @transform_4(%arg0: i32) -> (i32, i32) {
    %c0_i32 = arith.constant 0 : i32
    %c0_i32_0 = arith.constant 0 : i32
    %c0_i32_1 = arith.constant 0 : i32
    return %c0_i32, %c0_i32_0 : i32, i32
  }
}

</mosaic_0001>

<bundles_post_ra>
// kernel: rnn_model_forward.1
= control target key start
LH: loop header
LB: loop body
LE: loop exit
PB: predicated region body
PF: predicated region fallthrough
CT: control target
= control target key end

     0   :  { %9 = vsyncpa [#allocation3], 0  ;;  %s3222_s15 = smov [#allocation2]   ;;  %s4146_s0 = inlined_call_operand.vmem [shape: s32[64,1], index: 0, kind: input, shape index: {}]   ;;  %s4147_s1 = inlined_call_operand.vmem [shape: bf16[128,128], index: 1, kind: input, shape index: {}]   ;;  %s4148_s2 = inlined_call_operand.hbm [shape: bf16[640,128], index: 2, kind: input, shape index: {}]   ;;  %s4149_s3 = inlined_call_operand.vmem [shape: f32[24,128], index: 3, kind: input, shape index: {}]   ;;  %s4150_s4 = inlined_call_operand.vmem [shape: f32[64,128], index: 4, kind: output, shape index: {}]  }
   0x1   :  { %s19_s16 = sshll.u32 %s3222_s15, 4  ;;  %s3198_s19 = scalar_lea.hbm %s4148_s2, 5120  ;;  %s20_s16 = int_to_ptr.vmem [resolvable:$true] %s19_s16 }
   0x2   :  { %p3199_p0 = scmp.ne.s32.totalorder %s4148_s2, %s3198_s19  ;;  %p3202_p1 = scmp.lt.u32.totalorder %s3198_s19, %s4148_s2 }
   0x4   :  { %p3204_p2 = pnand %p3202_p1, %p3199_p0 }
   0x6   :  { %3207 = shalt.err (!%p3204_p2)
}
   0x7   :  { %s3208_s24 = scalar_lea.vmem %s20_s16, 5120  ;;  %p3213_p4 = scmp.lt.s32.totalorder %s20_s16, %s20_s16 }
   0x8   :  { %p3209_p3 = scmp.ne.s32.totalorder %s20_s16, %s3208_s24  ;;  %p3214_p5 = scmp.lt.s32.totalorder %s3208_s24, %s3208_s24 }
   0xa   :  { %p3215_p6 = por %p3214_p5, %p3213_p4 }
   0xc   :  { %p3216_p7 = pnand %p3215_p6, %p3209_p3 }
   0xe   :  { %3219 = shalt.err (!%p3216_p7)
}
   0xf   :  { %s3223_s25 = smov 64   ;;  %s3224_s26 = smov 4  }
  0x10   :  { %25 = dma.hbm_to_vmem [thread:$0]  %s4148_s2, 5120, %s20_s16, [#allocation3], %s3223_s25, %s3223_s25, %s3224_s26  }
  0x11   :  { %3220 = dma.done.wait [#allocation3], 5120  }
  0x12   :  { %3221 = vsyncadd [#allocation3], 4294962176  ;;  %v3225_v0 = vmov 0   ;;  %v34_v1 = vld [vmem:[%s4146_s0 + $0x10] sm:$0xff]  ;;  %v32_v2 = vld [vmem:[%s4146_s0] sm:$0xff]  ;;  %v3226_v24 = vmov 0.0   ;;  %v40_v25 = vlaneseq }
  0x13   :  { %3083 = vset.pattern.permute.xlu1 %v3225_v0  ;;  %3082 = vset.pattern.permute.xlu0 %v3225_v0  ;;  %v35_v3 = vld [vmem:[%s4146_s0 + $0x18] sm:$0xff]  ;;  %v33_v4 = vld [vmem:[%s4146_s0 + $0x8] sm:$0xff]  ;;  %v3084_v5 = vld [vmem:[%s4147_s1] sm:$0xff]   ;;  %v3227_v32 = vmov 1.0|1.0   ;;  %vm3228_vm12 = vmmov 0  }
  0x14   :  { %49 = vperm.xlu1 %3083, %v34_v1   ;;  %43 = vperm.xlu0 %3082, %v32_v2   ;;  %v3085_v6 = vld [vmem:[%s4147_s1 + $0x8] sm:$0xff]   ;;  %v36_v8 = vld [vmem:[%s4146_s0 + $0x20] sm:$0xff]  ;;  %v3086_v9 = vld [vmem:[%s4147_s1 + $0x10] sm:$0xff]   ;;  %v41_v28 = vand.u32 127, %v40_v25 }
  0x15   :  { %v37_v7 = vld [vmem:[%s4146_s0 + $0x28] sm:$0xff]  ;;  %2347 = vmatprep.subr.bf16.mxu0 %v3084_v5  ;;  %v39_v10 = vld [vmem:[%s4146_s0 + $0x38] sm:$0xff]  ;;  %v38_v11 = vld [vmem:[%s4146_s0 + $0x30] sm:$0xff] }
  0x16   :  { %2348 = vmatpush3.bf16.msra.mxu0 %v3084_v5  ;;  %v3087_v12 = vld [vmem:[%s4147_s1 + $0x18] sm:$0xff]   ;;  %v3088_v13 = vld [vmem:[%s4147_s1 + $0x20] sm:$0xff]   ;;  %v3094_v15 = vld [vmem:[#allocation2 + $0x8] sm:$0xff]  }
  0x17   :  { %2349 = vmatprep.subr.bf16.mxu0 %v3085_v6  ;;  %v3092_v14 = vld [vmem:[#allocation2] sm:$0xff]   ;;  %v3089_v16 = vld [vmem:[%s4147_s1 + $0x28] sm:$0xff]   ;;  %v3096_v17 = vld [vmem:[#allocation2 + $0x10] sm:$0xff]  }
  0x18   :  { %52 = vperm.xlu1 %3083, %v35_v3   ;;  %46 = vperm.xlu0 %3082, %v33_v4   ;;  %v3090_v18 = vld [vmem:[%s4147_s1 + $0x30] sm:$0xff]   ;;  %v3098_v19 = vld [vmem:[#allocation2 + $0x18] sm:$0xff]   ;;  %v3100_v21 = vld [vmem:[#allocation2 + $0x20] sm:$0xff]  }
  0x19   :  { %2371 = vmatprep.subr.bf16.mxu1 %v3092_v14  ;;  %v3091_v20 = vld [vmem:[%s4147_s1 + $0x38] sm:$0xff]   ;;  %v3102_v22 = vld [vmem:[#allocation2 + $0x28] sm:$0xff]   ;;  %v3104_v23 = vld [vmem:[#allocation2 + $0x30] sm:$0xff]  }
  0x1a   :  { %2350 = vmatpush3.bf16.msra.mxu0 %v3085_v6  ;;  %2372 = vmatpush3.bf16.msra.mxu1 %v3092_v14  ;;  %v3317_v31 = vld [vmem:[#allocation2 + $0x40] sm:$0xff]   ;;  %v3320_v35 = vld [vmem:[#allocation2 + $0x48] sm:$0xff]   ;;  %v3324_v38 = vld [vmem:[#allocation2 + $0x50] sm:$0xff]  }
  0x1b   :  { %2351 = vmatprep.subr.bf16.mxu0 %v3086_v9  ;;  %2373 = vmatprep.subr.bf16.mxu1 %v3094_v15  ;;  %v3328_v39 = vld [vmem:[#allocation2 + $0x58] sm:$0xff]   ;;  %v3332_v40 = vld [vmem:[#allocation2 + $0x60] sm:$0xff]   ;;  %v3336_v41 = vld [vmem:[#allocation2 + $0x68] sm:$0xff]  }
  0x1c   :  { %58 = vperm.xlu1 %3083, %v37_v7   ;;  %55 = vperm.xlu0 %3082, %v36_v8   ;;  %v3341_v42 = vld [vmem:[#allocation2 + $0x70] sm:$0xff]   ;;  %v3106_v43 = vld [vmem:[#allocation2 + $0x38] sm:$0xff]   ;;  %v3355_v51 = vld [vmem:[#allocation2 + $0x80] sm:$0xff]  }
  0x1d   :  { %v3345_v44 = vld [vmem:[#allocation2 + $0x78] sm:$0xff]   ;;  %v3358_v53 = vld [vmem:[#allocation2 + $0x88] sm:$0xff]   ;;  %v3362_v59 = vld [vmem:[#allocation2 + $0x90] sm:$0xff]  }
  0x1e   :  { %2352 = vmatpush3.bf16.msra.mxu0 %v3086_v9  ;;  %2374 = vmatpush3.bf16.msra.mxu1 %v3094_v15  ;;  %v3366_v60 = vld [vmem:[#allocation2 + $0x98] sm:$0xff]   ;;  %v3373_v63 = vld [vmem:[#allocation2 + $0xa0] sm:$0xff]   ;;  %v3377_v3 = vld [vmem:[#allocation2 + $0xa8] sm:$0xff]  }
  0x1f   :  { %2353 = vmatprep.subr.bf16.mxu0 %v3087_v12  ;;  %2375 = vmatprep.subr.bf16.mxu1 %v3096_v17  ;;  %v3381_v4 = vld [vmem:[#allocation2 + $0xb0] sm:$0xff]   ;;  %v3385_v5 = vld [vmem:[#allocation2 + $0xb8] sm:$0xff]   ;;  %v3389_v6 = vld [vmem:[#allocation2 + $0x100] sm:$0xff]  }
  0x20   :  { %64 = vperm.xlu1 %3083, %v39_v10   ;;  %61 = vperm.xlu0 %3082, %v38_v11   ;;  %v3392_v7 = vld [vmem:[#allocation2 + $0x108] sm:$0xff]   ;;  %v3396_v8 = vld [vmem:[#allocation2 + $0x110] sm:$0xff]   ;;  %v3400_v9 = vld [vmem:[#allocation2 + $0x118] sm:$0xff]  }
  0x21   :  { %v1992_v10 = vld [vmem:[%s4149_s3] ss:$0 sm:$0xff] }
  0x22   :  { %2354 = vmatpush3.bf16.msra.mxu0 %v3087_v12  ;;  %2376 = vmatpush3.bf16.msra.mxu1 %v3096_v17 }
  0x23   :  { %2355 = vmatprep.subr.bf16.mxu0 %v3088_v13  ;;  %2377 = vmatprep.subr.bf16.mxu1 %v3098_v19 }
  0x26   :  { %2356 = vmatpush3.bf16.msra.mxu0 %v3088_v13  ;;  %2378 = vmatpush3.bf16.msra.mxu1 %v3098_v19 }
  0x27   :  { %2357 = vmatprep.subr.bf16.mxu0 %v3089_v16  ;;  %2379 = vmatprep.subr.bf16.mxu1 %v3100_v21 }
  0x2a   :  { %2358 = vmatpush3.bf16.msra.mxu0 %v3089_v16  ;;  %2380 = vmatpush3.bf16.msra.mxu1 %v3100_v21 }
  0x2b   :  { %2359 = vmatprep.subr.bf16.mxu0 %v3090_v18  ;;  %2381 = vmatprep.subr.bf16.mxu1 %v3102_v22 }
  0x2e   :  { %2360 = vmatpush3.bf16.msra.mxu0 %v3090_v18  ;;  %2382 = vmatpush3.bf16.msra.mxu1 %v3102_v22 }
  0x2f   :  { %2361 = vmatprep.subr.bf16.mxu0 %v3091_v20  ;;  %2383 = vmatprep.subr.bf16.mxu1 %v3104_v23 }
  0x32   :  { %2362 = vmatpush3.bf16.msra.mxu0 %v3091_v20  ;;  %2384 = vmatpush3.bf16.msra.mxu1 %v3104_v23 }
  0x33   :  { %2395 = vmatprep.subr.bf16.mxu0 %v3226_v24  ;;  %2385 = vmatprep.subr.bf16.mxu1 %v3106_v43 }
  0x36   :  { %2386 = vmatpush3.bf16.msra.mxu1 %v3106_v43  ;;  %v3446_v43 = vld [vmem:[#allocation2 + $0xe8] sm:$0xff]  }
  0x37   :  { %2415 = vmatprep.subr.bf16.mxu1 %v3226_v24 }
  0x93   :  { %v50_v26 = vpop.permute.xlu1 %49  ;;  %v44_v27 = vpop.permute.xlu0 %43 }
  0x94   :  { %vm68_vm0 = vcmp.eq.s32.totalorder %v50_v26, %v41_v28  ;;  %vm66_vm3 = vcmp.eq.s32.totalorder %v44_v27, %v41_v28 }
  0x97   :  { %v53_v29 = vpop.permute.xlu1 %52  ;;  %v47_v30 = vpop.permute.xlu0 %46 }
  0x98   :  { %vm69_vm1 = vcmp.eq.s32.totalorder %v53_v29, %v41_v28  ;;  %vm67_vm2 = vcmp.eq.s32.totalorder %v47_v30, %v41_v28  ;;  %v3422_v30 = vld [vmem:[#allocation2 + $0xc0] sm:$0xff]  }
  0x99   :  { %vm1986_vm4 = vmpackc.low %vm69_vm1, %vm68_vm0 }
  0x9a   :  { %vm1984_vm5 = vmpackc.low %vm67_vm2, %vm66_vm3 }
  0x9b   :  { %2363 = vmatprep.mubr.msk.bf16.mxu0 %vm1984_vm5, %v3227_v32  ;;  %v59_v33 = vpop.permute.xlu1 %58  ;;  %v56_v34 = vpop.permute.xlu0 %55 }
  0x9c   :  { %vm71_vm6 = vcmp.eq.s32.totalorder %v59_v33, %v41_v28  ;;  %2364 = vmatmul.mubr.msk.bf16.vlgmr.msra.gmra.mrb[0].mxu0 %vm1986_vm4, %v3227_v32  ;;  %vm70_vm7 = vcmp.eq.s32.totalorder %v56_v34, %v41_v28  ;;  %v3428_v33 = vld [vmem:[#allocation2 + $0xc8] sm:$0xff]   ;;  %v3434_v34 = vld [vmem:[#allocation2 + $0xd0] sm:$0xff]  }
  0x9d   :  { %vm1988_vm8 = vmpackc.low %vm71_vm6, %vm70_vm7  ;;  %2396 = vmatpush3.bf16.msra.mxu0 %v3317_v31 }
  0x9e   :  { %2367 = vmatprep.mubr.msk.bf16.mxu0 %vm1988_vm8, %v3227_v32  ;;  %2397 = vmatprep.subr.bf16.mxu0 %v3226_v24 }
  0x9f   :  { %v65_v36 = vpop.permute.xlu1 %64  ;;  %v62_v37 = vpop.permute.xlu0 %61 }
  0xa0   :  { %vm73_vm9 = vcmp.eq.s32.totalorder %v65_v36, %v41_v28  ;;  %vm72_vm10 = vcmp.eq.s32.totalorder %v62_v37, %v41_v28  ;;  %v3438_v36 = vld [vmem:[#allocation2 + $0xd8] sm:$0xff]   ;;  %v3442_v37 = vld [vmem:[#allocation2 + $0xe0] sm:$0xff]  }
  0xa1   :  { %vm1990_vm11 = vmpackc.low %vm73_vm9, %vm72_vm10  ;;  %2398 = vmatpush3.bf16.msra.mxu0 %v3320_v35 }
  0xa2   :  { %2399 = vmatprep.subr.bf16.mxu0 %v3226_v24 }
  0xa4   :  { %2368 = vmatmul.mubr.msk.bf16.gmra.mrb[4].mxu0 %vm1990_vm11, %v3227_v32 }
  0xa5   :  { %2400 = vmatpush3.bf16.msra.mxu0 %v3324_v38  ;;  %2411 = vmatprep.mubr.msk.bf16.mxu0 %vm3228_vm12, %v3226_v24 }
  0xa6   :  { %2401 = vmatprep.subr.bf16.mxu0 %v3226_v24 }
  0xa9   :  { %2402 = vmatpush3.bf16.msra.mxu0 %v3328_v39 }
  0xaa   :  { %2403 = vmatprep.subr.bf16.mxu0 %v3226_v24 }
  0xad   :  { %2404 = vmatpush3.bf16.msra.mxu0 %v3332_v40 }
  0xae   :  { %2405 = vmatprep.subr.bf16.mxu0 %v3226_v24 }
  0xb1   :  { %2406 = vmatpush3.bf16.msra.mxu0 %v3336_v41 }
  0xb2   :  { %2407 = vmatprep.subr.bf16.mxu0 %v3226_v24 }
  0xb5   :  { %2408 = vmatpush3.bf16.msra.mxu0 %v3341_v42 }
  0xb6   :  { %2409 = vmatprep.subr.bf16.mxu0 %v3226_v24 }
  0xb9   :  { %2410 = vmatpush3.bf16.msra.mxu0 %v3345_v44 }
  0xba   :  { %2455 = vmatprep.subr.bf16.mxu0 %v3226_v24 }
  0xbc   :  { %2412 = vmatmul.mubr.bf16.vlgmr.msra.gmra.mrb[8].mxu0 %v3225_v0 }
  0xbd   :  { %2471 = vmatprep.mubr.msk.bf16.mxu0 %vm3228_vm12, %v3226_v24  ;;  %2456 = vmatpush3.bf16.msra.mxu0 %v3389_v6 }
  0xbe   :  { %2457 = vmatprep.subr.bf16.mxu0 %v3226_v24 }
  0xc1   :  { %2458 = vmatpush3.bf16.msra.mxu0 %v3392_v7 }
  0xc2   :  { %2459 = vmatprep.subr.bf16.mxu0 %v3226_v24 }
  0xc5   :  { %2460 = vmatpush3.bf16.msra.mxu0 %v3396_v8 }
  0xc6   :  { %2461 = vmatprep.subr.bf16.mxu0 %v3226_v24 }
  0xc9   :  { %2462 = vmatpush3.bf16.msra.mxu0 %v3400_v9 }
  0xca   :  { %2463 = vmatprep.subr.bf16.mxu0 %v3226_v24 }
 0x16f   :  { %v2365_v45 = vpop.f32.mrb[0].mxu0 }
 0x170   :  { %v192_v46 = vpop.f32.mrb[1].mxu0 }
 0x171   :  { %v2366_v47 = vpop.f32.mrb[2].mxu0 }
 0x172   :  { %v224_v48 = vpack.c.bf16 %v2366_v47, %v2365_v45  ;;  %v195_v49 = vpop.f32.mrb[3].mxu0  ;;  %v3450_v45 = vld [vmem:[#allocation2 + $0xf0] sm:$0xff]   ;;  %v3482_v47 = vld [vmem:[#allocation2 + $0x128] sm:$0xff]  }
 0x173   :  { %v223_v50 = vpack.c.bf16 %v195_v49, %v192_v46  ;;  %v3454_v46 = vld [vmem:[#allocation2 + $0xf8] sm:$0xff]  }
 0x174   :  { %v3490_v49 = vld [vmem:[#allocation2 + $0x138] sm:$0xff]  }
 0x175   :  { %2387 = vmatprep.mubr.bf16.mxu1 %v223_v50  ;;  %v3497_v50 = vld [vmem:[%s4149_s3 + $0x8] ss:$0 sm:$0xff] }
 0x176   :  { %2388 = vmatmul.mubr.bf16.vlgmr.msra.gmra.mrb[0].mxu1 %v224_v48  ;;  %v3486_v48 = vld [vmem:[#allocation2 + $0x130] sm:$0xff]  }
 0x177   :  { %v2369_v52 = vpop.f32.mrb[4].mxu0  ;;  %2416 = vmatpush3.bf16.msra.mxu1 %v3355_v51 }
 0x178   :  { %v208_v54 = vpop.f32.mrb[5].mxu0  ;;  %2417 = vmatprep.subr.bf16.mxu1 %v3226_v24 }
 0x179   :  { %v2370_v55 = vpop.f32.mrb[6].mxu0 }
 0x17a   :  { %v226_v56 = vpack.c.bf16 %v2370_v55, %v2369_v52  ;;  %v211_v57 = vpop.f32.mrb[7].mxu0 }
 0x17b   :  { %v225_v58 = vpack.c.bf16 %v211_v57, %v208_v54  ;;  %2418 = vmatpush3.bf16.msra.mxu1 %v3358_v53 }
 0x17c   :  { %2419 = vmatprep.subr.bf16.mxu1 %v3226_v24 }
 0x17d   :  { %2391 = vmatprep.mubr.bf16.mxu1 %v225_v58 }
 0x17e   :  { %2392 = vmatmul.mubr.bf16.gmra.mrb[4].mxu1 %v226_v56 }
 0x17f   :  { %2420 = vmatpush3.bf16.msra.mxu1 %v3362_v59  ;;  %2431 = vmatprep.mubr.msk.bf16.mxu1 %vm3228_vm12, %v3226_v24 }
 0x180   :  { %2421 = vmatprep.subr.bf16.mxu1 %v3226_v24 }
 0x183   :  { %2422 = vmatpush3.bf16.msra.mxu1 %v3366_v60 }
 0x184   :  { %2423 = vmatprep.subr.bf16.mxu1 %v3226_v24 }
 0x187   :  { %2424 = vmatpush3.bf16.msra.mxu1 %v3373_v63 }
 0x188   :  { %2425 = vmatprep.subr.bf16.mxu1 %v3226_v24 }
 0x18b   :  { %2426 = vmatpush3.bf16.msra.mxu1 %v3377_v3 }
 0x18c   :  { %2427 = vmatprep.subr.bf16.mxu1 %v3226_v24 }
 0x18f   :  { %v509_v61 = vpop.f32.mrb[8].mxu0  ;;  %2428 = vmatpush3.bf16.msra.mxu1 %v3381_v4 }
 0x190   :  { %v2413_v62 = vpop.f32.mrb[9].mxu0  ;;  %2429 = vmatprep.subr.bf16.mxu1 %v3226_v24 }
 0x191   :  { %v512_v1 = vpop.f32.mrb[10].mxu0  ;;  %v3543_v62 = vld [vmem:[%s4149_s3 + $0x10] ss:$0 sm:$0xff] }
 0x192   :  { %v2414_v2 = vpop.f32.mrb[11].mxu0 }
 0x193   :  { %2430 = vmatpush3.bf16.msra.mxu1 %v3385_v5 }
 0x194   :  { %2435 = vmatprep.subr.bf16.mxu1 %v3226_v24 }
 0x249   :  { %v2389_v11 = vpop.f32.mrb[0].mxu1 }
 0x24a   :  { %v3408_v12 = vadd.f32 %v2389_v11, %v1992_v10  ;;  %v396_v13 = vpop.f32.mrb[1].mxu1 }
 0x24b   :  { %v397_v14 = vadd.f32 %v1992_v10, %v396_v13  ;;  %v2390_v15 = vpop.f32.mrb[2].mxu1 }
 0x24c   :  { %v3410_v16 = vadd.f32 %v2390_v15, %v1992_v10  ;;  %v399_v17 = vpop.f32.mrb[3].mxu1 }
 0x24d   :  { %v515_v18 = vadd.f32 %v509_v61, %v397_v14  ;;  %v3412_v19 = vadd.f32 %v1992_v10, %v399_v17 }
 0x24f   :  { %3132 = vtanh.f32 %v515_v18 }
 0x251   :  { %v2393_v20 = vpop.f32.mrb[4].mxu1 }
 0x252   :  { %v3414_v21 = vadd.f32 %v2393_v20, %v1992_v10  ;;  %v412_v22 = vpop.f32.mrb[5].mxu1 }
 0x253   :  { %v3416_v23 = vadd.f32 %v1992_v10, %v412_v22  ;;  %v2394_v25 = vpop.f32.mrb[6].mxu1 }
 0x254   :  { %v3418_v26 = vadd.f32 %v2394_v25, %v1992_v10  ;;  %v415_v27 = vpop.f32.mrb[7].mxu1 }
 0x255   :  { %v3420_v28 = vadd.f32 %v1992_v10, %v415_v27 }
 0x259   :  { %v3133_v29 = vpop.eup %3132 }
 0x25a   :  { %v3424_v32 = vpack.c.bf16 %v3133_v29, %v3133_v29 }
 0x25c   :  { %2432 = vmatmul.mubr.bf16.vlgmr.msra.gmra.mrb[8].mxu1 %v3424_v32 }
 0x25d   :  { %2436 = vmatpush3.bf16.msra.mxu1 %v3422_v30  ;;  %2451 = vmatprep.mubr.msk.bf16.mxu1 %vm3228_vm12, %v3226_v24 }
 0x25e   :  { %2437 = vmatprep.subr.bf16.mxu1 %v3226_v24 }
 0x261   :  { %2438 = vmatpush3.bf16.msra.mxu1 %v3428_v33 }
 0x262   :  { %2439 = vmatprep.subr.bf16.mxu1 %v3226_v24 }
 0x265   :  { %2440 = vmatpush3.bf16.msra.mxu1 %v3434_v34 }
 0x266   :  { %2441 = vmatprep.subr.bf16.mxu1 %v3226_v24 }
 0x269   :  { %2442 = vmatpush3.bf16.msra.mxu1 %v3438_v36 }
 0x26a   :  { %2443 = vmatprep.subr.bf16.mxu1 %v3226_v24 }
 0x26d   :  { %2444 = vmatpush3.bf16.msra.mxu1 %v3442_v37 }
 0x26e   :  { %2445 = vmatprep.subr.bf16.mxu1 %v3226_v24 }
 0x271   :  { %2446 = vmatpush3.bf16.msra.mxu1 %v3446_v43 }
 0x272   :  { %2447 = vmatprep.subr.bf16.mxu1 %v3226_v24 }
 0x275   :  { %2448 = vmatpush3.bf16.msra.mxu1 %v3450_v45 }
 0x276   :  { %2449 = vmatprep.subr.bf16.mxu1 %v3226_v24 }
 0x279   :  { %2450 = vmatpush3.bf16.msra.mxu1 %v3454_v46 }
 0x27a   :  { %2495 = vmatprep.subr.bf16.mxu1 %v3226_v24 }
 0x27c   :  { %2452 = vmatmul.mubr.bf16.vlgmr.msra.gmra.mrb[8].mxu1 %v3225_v0  ;;  %v3478_v0 = vld [vmem:[#allocation2 + $0x120] sm:$0xff]  }
 0x27d   :  { %2496 = vmatpush3.bf16.msra.mxu1 %v3355_v51  ;;  %2511 = vmatprep.mubr.msk.bf16.mxu1 %vm3228_vm12, %v3226_v24 }
 0x27e   :  { %2497 = vmatprep.subr.bf16.mxu1 %v3226_v24  ;;  %2464 = vmatpush3.bf16.msra.mxu0 %v3478_v0 }
 0x27f   :  { %2465 = vmatprep.subr.bf16.mxu0 %v3226_v24 }
 0x281   :  { %2498 = vmatpush3.bf16.msra.mxu1 %v3358_v53 }
 0x282   :  { %2499 = vmatprep.subr.bf16.mxu1 %v3226_v24  ;;  %2466 = vmatpush3.bf16.msra.mxu0 %v3482_v47 }
 0x283   :  { %2467 = vmatprep.subr.bf16.mxu0 %v3226_v24 }
 0x285   :  { %2500 = vmatpush3.bf16.msra.mxu1 %v3362_v59 }
 0x286   :  { %2501 = vmatprep.subr.bf16.mxu1 %v3226_v24  ;;  %2468 = vmatpush3.bf16.msra.mxu0 %v3486_v48 }
 0x287   :  { %2469 = vmatprep.subr.bf16.mxu0 %v3226_v24 }
 0x289   :  { %2502 = vmatpush3.bf16.msra.mxu1 %v3366_v60 }
 0x28a   :  { %2503 = vmatprep.subr.bf16.mxu1 %v3226_v24  ;;  %2470 = vmatpush3.bf16.msra.mxu0 %v3490_v49 }
 0x28b   :  { %2475 = vmatprep.subr.bf16.mxu0 %v3226_v24 }
 0x28d   :  { %2504 = vmatpush3.bf16.msra.mxu1 %v3373_v63 }
 0x28e   :  { %2505 = vmatprep.subr.bf16.mxu1 %v3226_v24 }
 0x291   :  { %2506 = vmatpush3.bf16.msra.mxu1 %v3377_v3 }
 0x292   :  { %2507 = vmatprep.subr.bf16.mxu1 %v3226_v24 }
 0x295   :  { %2508 = vmatpush3.bf16.msra.mxu1 %v3381_v4 }
 0x296   :  { %2509 = vmatprep.subr.bf16.mxu1 %v3226_v24 }
 0x299   :  { %2510 = vmatpush3.bf16.msra.mxu1 %v3385_v5 }
 0x29a   :  { %2515 = vmatprep.subr.bf16.mxu1 %v3226_v24 }
 0x34f   :  { %v692_v52 = vpop.f32.mrb[8].mxu1 }
 0x350   :  { %v3035_v54 = vadd.f32 %v3497_v50, %v692_v52  ;;  %v2453_v55 = vpop.f32.mrb[9].mxu1 }
 0x351   :  { %v695_v56 = vpop.f32.mrb[10].mxu1 }
 0x352   :  { %3134 = vtanh.f32 %v3035_v54  ;;  %v2454_v57 = vpop.f32.mrb[11].mxu1 }
 0x35c   :  { %v3135_v58 = vpop.eup %3134 }
 0x35d   :  { %v3500_v61 = vpack.c.bf16 %v3135_v58, %v3135_v58 }
 0x35f   :  { %2472 = vmatmul.mubr.bf16.vlgmr.msra.gmra.mrb[12].mxu0 %v3500_v61 }
 0x360   :  { %2476 = vmatpush3.bf16.msra.mxu0 %v3317_v31  ;;  %2491 = vmatprep.mubr.msk.bf16.mxu0 %vm3228_vm12, %v3226_v24 }
 0x361   :  { %2477 = vmatprep.subr.bf16.mxu0 %v3226_v24 }
 0x364   :  { %2478 = vmatpush3.bf16.msra.mxu0 %v3320_v35 }
 0x365   :  { %2479 = vmatprep.subr.bf16.mxu0 %v3226_v24 }
 0x368   :  { %2480 = vmatpush3.bf16.msra.mxu0 %v3324_v38 }
 0x369   :  { %2481 = vmatprep.subr.bf16.mxu0 %v3226_v24 }
 0x36c   :  { %2482 = vmatpush3.bf16.msra.mxu0 %v3328_v39 }
 0x36d   :  { %2483 = vmatprep.subr.bf16.mxu0 %v3226_v24 }
 0x370   :  { %2484 = vmatpush3.bf16.msra.mxu0 %v3332_v40 }
 0x371   :  { %2485 = vmatprep.subr.bf16.mxu0 %v3226_v24 }
 0x374   :  { %2486 = vmatpush3.bf16.msra.mxu0 %v3336_v41 }
 0x375   :  { %2487 = vmatprep.subr.bf16.mxu0 %v3226_v24 }
 0x378   :  { %2488 = vmatpush3.bf16.msra.mxu0 %v3341_v42 }
 0x379   :  { %2489 = vmatprep.subr.bf16.mxu0 %v3226_v24 }
 0x37c   :  { %2490 = vmatpush3.bf16.msra.mxu0 %v3345_v44 }
 0x37d   :  { %2535 = vmatprep.subr.bf16.mxu0 %v3226_v24 }
 0x37f   :  { %2492 = vmatmul.mubr.bf16.vlgmr.msra.gmra.mrb[16].mxu0 %v3424_v32 }
 0x380   :  { %2536 = vmatpush3.bf16.msra.mxu0 %v3389_v6  ;;  %2551 = vmatprep.mubr.msk.bf16.mxu0 %vm3228_vm12, %v3226_v24 }
 0x381   :  { %2537 = vmatprep.subr.bf16.mxu0 %v3226_v24 }
 0x384   :  { %2538 = vmatpush3.bf16.msra.mxu0 %v3392_v7 }
 0x385   :  { %2539 = vmatprep.subr.bf16.mxu0 %v3226_v24 }
 0x388   :  { %2540 = vmatpush3.bf16.msra.mxu0 %v3396_v8 }
 0x389   :  { %2541 = vmatprep.subr.bf16.mxu0 %v3226_v24 }
 0x38c   :  { %2542 = vmatpush3.bf16.msra.mxu0 %v3400_v9 }
 0x38d   :  { %2543 = vmatprep.subr.bf16.mxu0 %v3226_v24 }
 0x390   :  { %2544 = vmatpush3.bf16.msra.mxu0 %v3478_v0 }
 0x391   :  { %2545 = vmatprep.subr.bf16.mxu0 %v3226_v24 }
 0x394   :  { %2546 = vmatpush3.bf16.msra.mxu0 %v3482_v47 }
 0x395   :  { %2547 = vmatprep.subr.bf16.mxu0 %v3226_v24 }
 0x398   :  { %2548 = vmatpush3.bf16.msra.mxu0 %v3486_v48 }
 0x399   :  { %2549 = vmatprep.subr.bf16.mxu0 %v3226_v24 }
 0x39c   :  { %2550 = vmatpush3.bf16.msra.mxu0 %v3490_v49 }
 0x39d   :  { %2555 = vmatprep.subr.bf16.mxu0 %v3226_v24 }
 0x432   :  { %v787_v1 = vpop.f32.mrb[12].mxu0 }
 0x433   :  { %v788_v2 = vadd.f32 %v3543_v62, %v787_v1  ;;  %v2473_v10 = vpop.f32.mrb[13].mxu0 }
 0x434   :  { %v790_v11 = vpop.f32.mrb[14].mxu0 }
 0x435   :  { %793 = vst [vmem:[%s4150_s4] sm:$0xff] %v788_v2  ;;  %v2474_v13 = vpop.f32.mrb[15].mxu0 }
 0x452   :  { %v828_v14 = vpop.f32.mrb[16].mxu0 }
 0x453   :  { %v834_v15 = vadd.f32 %v828_v14, %v3412_v19  ;;  %v2493_v17 = vpop.f32.mrb[17].mxu0 }
 0x454   :  { %v831_v18 = vpop.f32.mrb[18].mxu0 }
 0x455   :  { %3136 = vtanh.f32 %v834_v15  ;;  %v2494_v20 = vpop.f32.mrb[19].mxu0 }
 0x45f   :  { %v3137_v22 = vpop.eup %3136 }
 0x460   :  { %v836_v25 = vpack.c.bf16 %v3137_v22, %v3137_v22 }
 0x462   :  { %2512 = vmatmul.mubr.bf16.vlgmr.msra.gmra.mrb[12].mxu1 %v836_v25 }
 0x463   :  { %2516 = vmatpush3.bf16.msra.mxu1 %v3422_v30  ;;  %2531 = vmatprep.mubr.msk.bf16.mxu1 %vm3228_vm12, %v3226_v24 }
 0x464   :  { %2517 = vmatprep.subr.bf16.mxu1 %v3226_v24 }
 0x467   :  { %2518 = vmatpush3.bf16.msra.mxu1 %v3428_v33 }
 0x468   :  { %2519 = vmatprep.subr.bf16.mxu1 %v3226_v24 }
 0x46b   :  { %2520 = vmatpush3.bf16.msra.mxu1 %v3434_v34 }
 0x46c   :  { %2521 = vmatprep.subr.bf16.mxu1 %v3226_v24 }
 0x46f   :  { %2522 = vmatpush3.bf16.msra.mxu1 %v3438_v36 }
 0x470   :  { %2523 = vmatprep.subr.bf16.mxu1 %v3226_v24 }
 0x473   :  { %2524 = vmatpush3.bf16.msra.mxu1 %v3442_v37 }
 0x474   :  { %2525 = vmatprep.subr.bf16.mxu1 %v3226_v24 }
 0x477   :  { %2526 = vmatpush3.bf16.msra.mxu1 %v3446_v43 }
 0x478   :  { %2527 = vmatprep.subr.bf16.mxu1 %v3226_v24 }
 0x47b   :  { %2528 = vmatpush3.bf16.msra.mxu1 %v3450_v45 }
 0x47c   :  { %2529 = vmatprep.subr.bf16.mxu1 %v3226_v24 }
 0x47f   :  { %2530 = vmatpush3.bf16.msra.mxu1 %v3454_v46 }
 0x480   :  { %2575 = vmatprep.subr.bf16.mxu1 %v3226_v24 }
 0x482   :  { %2532 = vmatmul.mubr.bf16.vlgmr.msra.gmra.mrb[12].mxu1 %v3500_v61 }
 0x483   :  { %2576 = vmatpush3.bf16.msra.mxu1 %v3355_v51  ;;  %2591 = vmatprep.mubr.msk.bf16.mxu1 %vm3228_vm12, %v3226_v24 }
 0x484   :  { %2577 = vmatprep.subr.bf16.mxu1 %v3226_v24 }
 0x487   :  { %2578 = vmatpush3.bf16.msra.mxu1 %v3358_v53 }
 0x488   :  { %2579 = vmatprep.subr.bf16.mxu1 %v3226_v24 }
 0x48b   :  { %2580 = vmatpush3.bf16.msra.mxu1 %v3362_v59 }
 0x48c   :  { %2581 = vmatprep.subr.bf16.mxu1 %v3226_v24 }
 0x48f   :  { %2582 = vmatpush3.bf16.msra.mxu1 %v3366_v60 }
 0x490   :  { %2583 = vmatprep.subr.bf16.mxu1 %v3226_v24 }
 0x493   :  { %2584 = vmatpush3.bf16.msra.mxu1 %v3373_v63 }
 0x494   :  { %2585 = vmatprep.subr.bf16.mxu1 %v3226_v24 }
 0x497   :  { %2586 = vmatpush3.bf16.msra.mxu1 %v3377_v3 }
 0x498   :  { %2587 = vmatprep.subr.bf16.mxu1 %v3226_v24 }
 0x49b   :  { %2588 = vmatpush3.bf16.msra.mxu1 %v3381_v4 }
 0x49c   :  { %2589 = vmatprep.subr.bf16.mxu1 %v3226_v24 }
 0x49f   :  { %2590 = vmatpush3.bf16.msra.mxu1 %v3385_v5 }
 0x4a0   :  { %2595 = vmatprep.subr.bf16.mxu1 %v3226_v24 }
 0x555   :  { %v911_v19 = vpop.f32.mrb[12].mxu1 }
 0x556   :  { %v3036_v27 = vadd.f32 %v3497_v50, %v911_v19  ;;  %v2533_v29 = vpop.f32.mrb[13].mxu1 }
 0x557   :  { %v914_v32 = vpop.f32.mrb[14].mxu1 }
 0x558   :  { %3138 = vtanh.f32 %v3036_v27  ;;  %v2534_v52 = vpop.f32.mrb[15].mxu1 }
 0x562   :  { %v3139_v54 = vpop.eup %3138 }
 0x563   :  { %v3588_v55 = vpack.c.bf16 %v3139_v54, %v3139_v54 }
 0x565   :  { %2552 = vmatmul.mubr.bf16.vlgmr.msra.gmra.mrb[20].mxu0 %v3588_v55 }
 0x566   :  { %2556 = vmatpush3.bf16.msra.mxu0 %v3317_v31  ;;  %2571 = vmatprep.mubr.msk.bf16.mxu0 %vm3228_vm12, %v3226_v24 }
 0x567   :  { %2557 = vmatprep.subr.bf16.mxu0 %v3226_v24 }
 0x56a   :  { %2558 = vmatpush3.bf16.msra.mxu0 %v3320_v35 }
 0x56b   :  { %2559 = vmatprep.subr.bf16.mxu0 %v3226_v24 }
 0x56e   :  { %2560 = vmatpush3.bf16.msra.mxu0 %v3324_v38 }
 0x56f   :  { %2561 = vmatprep.subr.bf16.mxu0 %v3226_v24 }
 0x572   :  { %2562 = vmatpush3.bf16.msra.mxu0 %v3328_v39 }
 0x573   :  { %2563 = vmatprep.subr.bf16.mxu0 %v3226_v24 }
 0x576   :  { %2564 = vmatpush3.bf16.msra.mxu0 %v3332_v40 }
 0x577   :  { %2565 = vmatprep.subr.bf16.mxu0 %v3226_v24 }
 0x57a   :  { %2566 = vmatpush3.bf16.msra.mxu0 %v3336_v41 }
 0x57b   :  { %2567 = vmatprep.subr.bf16.mxu0 %v3226_v24 }
 0x57e   :  { %2568 = vmatpush3.bf16.msra.mxu0 %v3341_v42 }
 0x57f   :  { %2569 = vmatprep.subr.bf16.mxu0 %v3226_v24 }
 0x582   :  { %2570 = vmatpush3.bf16.msra.mxu0 %v3345_v44 }
 0x583   :  { %2615 = vmatprep.subr.bf16.mxu0 %v3226_v24 }
 0x585   :  { %2572 = vmatmul.mubr.bf16.vlgmr.msra.gmra.mrb[24].mxu0 %v836_v25 }
 0x586   :  { %2616 = vmatpush3.bf16.msra.mxu0 %v3389_v6  ;;  %2631 = vmatprep.mubr.msk.bf16.mxu0 %vm3228_vm12, %v3226_v24 }
 0x587   :  { %2617 = vmatprep.subr.bf16.mxu0 %v3226_v24 }
 0x58a   :  { %2618 = vmatpush3.bf16.msra.mxu0 %v3392_v7 }
 0x58b   :  { %2619 = vmatprep.subr.bf16.mxu0 %v3226_v24 }
 0x58e   :  { %2620 = vmatpush3.bf16.msra.mxu0 %v3396_v8 }
 0x58f   :  { %2621 = vmatprep.subr.bf16.mxu0 %v3226_v24 }
 0x592   :  { %2622 = vmatpush3.bf16.msra.mxu0 %v3400_v9 }
 0x593   :  { %2623 = vmatprep.subr.bf16.mxu0 %v3226_v24 }
 0x596   :  { %2624 = vmatpush3.bf16.msra.mxu0 %v3478_v0 }
 0x597   :  { %2625 = vmatprep.subr.bf16.mxu0 %v3226_v24 }
 0x59a   :  { %2626 = vmatpush3.bf16.msra.mxu0 %v3482_v47 }
 0x59b   :  { %2627 = vmatprep.subr.bf16.mxu0 %v3226_v24 }
 0x59e   :  { %2628 = vmatpush3.bf16.msra.mxu0 %v3486_v48 }
 0x59f   :  { %2629 = vmatprep.subr.bf16.mxu0 %v3226_v24 }
 0x5a2   :  { %2630 = vmatpush3.bf16.msra.mxu0 %v3490_v49 }
 0x5a3   :  { %2635 = vmatprep.subr.bf16.mxu0 %v3226_v24 }
 0x638   :  { %v954_v56 = vpop.f32.mrb[20].mxu0 }
 0x639   :  { %v955_v57 = vadd.f32 %v3543_v62, %v954_v56  ;;  %v2553_v58 = vpop.f32.mrb[21].mxu0 }
 0x63a   :  { %v957_v61 = vpop.f32.mrb[22].mxu0 }
 0x63b   :  { %960 = vst [vmem:[%s4150_s4 + $0x8] sm:$0xff] %v955_v57  ;;  %v2554_v1 = vpop.f32.mrb[23].mxu0 }
 0x658   :  { %v995_v2 = vpop.f32.mrb[24].mxu0 }
 0x659   :  { %v1001_v10 = vadd.f32 %v995_v2, %v3408_v12  ;;  %v2573_v11 = vpop.f32.mrb[25].mxu0 }
 0x65a   :  { %v998_v13 = vpop.f32.mrb[26].mxu0 }
 0x65b   :  { %3140 = vtanh.f32 %v1001_v10  ;;  %v2574_v14 = vpop.f32.mrb[27].mxu0 }
 0x665   :  { %v3141_v15 = vpop.eup %3140 }
 0x666   :  { %v1003_v17 = vpack.c.bf16 %v3141_v15, %v3141_v15 }
 0x668   :  { %2592 = vmatmul.mubr.bf16.vlgmr.msra.gmra.mrb[16].mxu1 %v1003_v17 }
 0x669   :  { %2596 = vmatpush3.bf16.msra.mxu1 %v3422_v30  ;;  %2611 = vmatprep.mubr.msk.bf16.mxu1 %vm3228_vm12, %v3226_v24 }
 0x66a   :  { %2597 = vmatprep.subr.bf16.mxu1 %v3226_v24 }
 0x66d   :  { %2598 = vmatpush3.bf16.msra.mxu1 %v3428_v33 }
 0x66e   :  { %2599 = vmatprep.subr.bf16.mxu1 %v3226_v24 }
 0x671   :  { %2600 = vmatpush3.bf16.msra.mxu1 %v3434_v34 }
 0x672   :  { %2601 = vmatprep.subr.bf16.mxu1 %v3226_v24 }
 0x675   :  { %2602 = vmatpush3.bf16.msra.mxu1 %v3438_v36 }
 0x676   :  { %2603 = vmatprep.subr.bf16.mxu1 %v3226_v24 }
 0x679   :  { %2604 = vmatpush3.bf16.msra.mxu1 %v3442_v37 }
 0x67a   :  { %2605 = vmatprep.subr.bf16.mxu1 %v3226_v24 }
 0x67d   :  { %2606 = vmatpush3.bf16.msra.mxu1 %v3446_v43 }
 0x67e   :  { %2607 = vmatprep.subr.bf16.mxu1 %v3226_v24 }
 0x681   :  { %2608 = vmatpush3.bf16.msra.mxu1 %v3450_v45 }
 0x682   :  { %2609 = vmatprep.subr.bf16.mxu1 %v3226_v24 }
 0x685   :  { %2610 = vmatpush3.bf16.msra.mxu1 %v3454_v46 }
 0x686   :  { %2655 = vmatprep.subr.bf16.mxu1 %v3226_v24 }
 0x688   :  { %2612 = vmatmul.mubr.bf16.vlgmr.msra.gmra.mrb[16].mxu1 %v3588_v55 }
 0x689   :  { %2656 = vmatpush3.bf16.msra.mxu1 %v3355_v51  ;;  %2671 = vmatprep.mubr.msk.bf16.mxu1 %vm3228_vm12, %v3226_v24 }
 0x68a   :  { %2657 = vmatprep.subr.bf16.mxu1 %v3226_v24 }
 0x68d   :  { %2658 = vmatpush3.bf16.msra.mxu1 %v3358_v53 }
 0x68e   :  { %2659 = vmatprep.subr.bf16.mxu1 %v3226_v24 }
 0x691   :  { %2660 = vmatpush3.bf16.msra.mxu1 %v3362_v59 }
 0x692   :  { %2661 = vmatprep.subr.bf16.mxu1 %v3226_v24 }
 0x695   :  { %2662 = vmatpush3.bf16.msra.mxu1 %v3366_v60 }
 0x696   :  { %2663 = vmatprep.subr.bf16.mxu1 %v3226_v24 }
 0x699   :  { %2664 = vmatpush3.bf16.msra.mxu1 %v3373_v63 }
 0x69a   :  { %2665 = vmatprep.subr.bf16.mxu1 %v3226_v24 }
 0x69d   :  { %2666 = vmatpush3.bf16.msra.mxu1 %v3377_v3 }
 0x69e   :  { %2667 = vmatprep.subr.bf16.mxu1 %v3226_v24 }
 0x6a1   :  { %2668 = vmatpush3.bf16.msra.mxu1 %v3381_v4 }
 0x6a2   :  { %2669 = vmatprep.subr.bf16.mxu1 %v3226_v24 }
 0x6a5   :  { %2670 = vmatpush3.bf16.msra.mxu1 %v3385_v5 }
 0x6a6   :  { %2675 = vmatprep.subr.bf16.mxu1 %v3226_v24 }
 0x75b   :  { %v1078_v12 = vpop.f32.mrb[16].mxu1 }
 0x75c   :  { %v3037_v18 = vadd.f32 %v3497_v50, %v1078_v12  ;;  %v2613_v20 = vpop.f32.mrb[17].mxu1 }
 0x75d   :  { %v1081_v22 = vpop.f32.mrb[18].mxu1 }
 0x75e   :  { %3142 = vtanh.f32 %v3037_v18  ;;  %v2614_v25 = vpop.f32.mrb[19].mxu1 }
 0x768   :  { %v3143_v19 = vpop.eup %3142 }
 0x769   :  { %v3670_v27 = vpack.c.bf16 %v3143_v19, %v3143_v19 }
 0x76b   :  { %2632 = vmatmul.mubr.bf16.vlgmr.msra.gmra.mrb[28].mxu0 %v3670_v27 }
 0x76c   :  { %2636 = vmatpush3.bf16.msra.mxu0 %v3317_v31  ;;  %2651 = vmatprep.mubr.msk.bf16.mxu0 %vm3228_vm12, %v3226_v24 }
 0x76d   :  { %2637 = vmatprep.subr.bf16.mxu0 %v3226_v24 }
 0x770   :  { %2638 = vmatpush3.bf16.msra.mxu0 %v3320_v35 }
 0x771   :  { %2639 = vmatprep.subr.bf16.mxu0 %v3226_v24 }
 0x774   :  { %2640 = vmatpush3.bf16.msra.mxu0 %v3324_v38 }
 0x775   :  { %2641 = vmatprep.subr.bf16.mxu0 %v3226_v24 }
 0x778   :  { %2642 = vmatpush3.bf16.msra.mxu0 %v3328_v39 }
 0x779   :  { %2643 = vmatprep.subr.bf16.mxu0 %v3226_v24 }
 0x77c   :  { %2644 = vmatpush3.bf16.msra.mxu0 %v3332_v40 }
 0x77d   :  { %2645 = vmatprep.subr.bf16.mxu0 %v3226_v24 }
 0x780   :  { %2646 = vmatpush3.bf16.msra.mxu0 %v3336_v41 }
 0x781   :  { %2647 = vmatprep.subr.bf16.mxu0 %v3226_v24 }
 0x784   :  { %2648 = vmatpush3.bf16.msra.mxu0 %v3341_v42 }
 0x785   :  { %2649 = vmatprep.subr.bf16.mxu0 %v3226_v24 }
 0x788   :  { %2650 = vmatpush3.bf16.msra.mxu0 %v3345_v44 }
 0x789   :  { %2695 = vmatprep.subr.bf16.mxu0 %v3226_v24 }
 0x78b   :  { %2652 = vmatmul.mubr.bf16.vlgmr.msra.gmra.mrb[32].mxu0 %v1003_v17 }
 0x78c   :  { %2696 = vmatpush3.bf16.msra.mxu0 %v3389_v6  ;;  %2711 = vmatprep.mubr.msk.bf16.mxu0 %vm3228_vm12, %v3226_v24 }
 0x78d   :  { %2697 = vmatprep.subr.bf16.mxu0 %v3226_v24 }
 0x790   :  { %2698 = vmatpush3.bf16.msra.mxu0 %v3392_v7 }
 0x791   :  { %2699 = vmatprep.subr.bf16.mxu0 %v3226_v24 }
 0x794   :  { %2700 = vmatpush3.bf16.msra.mxu0 %v3396_v8 }
 0x795   :  { %2701 = vmatprep.subr.bf16.mxu0 %v3226_v24 }
 0x798   :  { %2702 = vmatpush3.bf16.msra.mxu0 %v3400_v9 }
 0x799   :  { %2703 = vmatprep.subr.bf16.mxu0 %v3226_v24 }
 0x79c   :  { %2704 = vmatpush3.bf16.msra.mxu0 %v3478_v0 }
 0x79d   :  { %2705 = vmatprep.subr.bf16.mxu0 %v3226_v24 }
 0x7a0   :  { %2706 = vmatpush3.bf16.msra.mxu0 %v3482_v47 }
 0x7a1   :  { %2707 = vmatprep.subr.bf16.mxu0 %v3226_v24 }
 0x7a4   :  { %2708 = vmatpush3.bf16.msra.mxu0 %v3486_v48 }
 0x7a5   :  { %2709 = vmatprep.subr.bf16.mxu0 %v3226_v24 }
 0x7a8   :  { %2710 = vmatpush3.bf16.msra.mxu0 %v3490_v49 }
 0x7a9   :  { %2715 = vmatprep.subr.bf16.mxu0 %v3226_v24 }
 0x83e   :  { %v1121_v29 = vpop.f32.mrb[28].mxu0 }
 0x83f   :  { %v1122_v32 = vadd.f32 %v3543_v62, %v1121_v29  ;;  %v2633_v52 = vpop.f32.mrb[29].mxu0  ;;  %v3858_v29 = vld [vmem:[#allocation2 + $0x60] sm:$0xff]  }
 0x840   :  { %v1124_v54 = vpop.f32.mrb[30].mxu0  ;;  %v3866_v52 = vld [vmem:[#allocation2 + $0x70] sm:$0xff]  }
 0x841   :  { %1127 = vst [vmem:[%s4150_s4 + $0x10] sm:$0xff] %v1122_v32  ;;  %v2634_v55 = vpop.f32.mrb[31].mxu0  ;;  %v3862_v32 = vld [vmem:[#allocation2 + $0x68] sm:$0xff]   ;;  %v3870_v54 = vld [vmem:[#allocation2 + $0x78] sm:$0xff]  }
 0x85e   :  { %v1162_v56 = vpop.f32.mrb[32].mxu0 }
 0x85f   :  { %v1168_v57 = vadd.f32 %v1162_v56, %v3410_v16  ;;  %v2653_v58 = vpop.f32.mrb[33].mxu0 }
 0x860   :  { %v1165_v61 = vpop.f32.mrb[34].mxu0 }
 0x861   :  { %3144 = vtanh.f32 %v1168_v57  ;;  %v2654_v1 = vpop.f32.mrb[35].mxu0 }
 0x86b   :  { %v3145_v2 = vpop.eup %3144 }
 0x86c   :  { %v1170_v10 = vpack.c.bf16 %v3145_v2, %v3145_v2 }
 0x86e   :  { %2672 = vmatmul.mubr.bf16.vlgmr.msra.gmra.mrb[20].mxu1 %v1170_v10 }
 0x86f   :  { %2676 = vmatpush3.bf16.msra.mxu1 %v3422_v30  ;;  %2691 = vmatprep.mubr.msk.bf16.mxu1 %vm3228_vm12, %v3226_v24 }
 0x870   :  { %2677 = vmatprep.subr.bf16.mxu1 %v3226_v24 }
 0x873   :  { %2678 = vmatpush3.bf16.msra.mxu1 %v3428_v33 }
 0x874   :  { %2679 = vmatprep.subr.bf16.mxu1 %v3226_v24 }
 0x877   :  { %2680 = vmatpush3.bf16.msra.mxu1 %v3434_v34 }
 0x878   :  { %2681 = vmatprep.subr.bf16.mxu1 %v3226_v24 }
 0x87b   :  { %2682 = vmatpush3.bf16.msra.mxu1 %v3438_v36 }
 0x87c   :  { %2683 = vmatprep.subr.bf16.mxu1 %v3226_v24 }
 0x87f   :  { %2684 = vmatpush3.bf16.msra.mxu1 %v3442_v37 }
 0x880   :  { %2685 = vmatprep.subr.bf16.mxu1 %v3226_v24 }
 0x883   :  { %2686 = vmatpush3.bf16.msra.mxu1 %v3446_v43 }
 0x884   :  { %2687 = vmatprep.subr.bf16.mxu1 %v3226_v24 }
 0x887   :  { %2688 = vmatpush3.bf16.msra.mxu1 %v3450_v45 }
 0x888   :  { %2689 = vmatprep.subr.bf16.mxu1 %v3226_v24 }
 0x88b   :  { %2690 = vmatpush3.bf16.msra.mxu1 %v3454_v46 }
 0x88c   :  { %2735 = vmatprep.subr.bf16.mxu1 %v3226_v24 }
 0x88e   :  { %2692 = vmatmul.mubr.bf16.vlgmr.msra.gmra.mrb[20].mxu1 %v3670_v27  ;;  %v3854_v27 = vld [vmem:[#allocation2 + $0x58] sm:$0xff]  }
 0x88f   :  { %2736 = vmatpush3.bf16.msra.mxu1 %v3355_v51  ;;  %2751 = vmatprep.mubr.msk.bf16.mxu1 %vm3228_vm12, %v3226_v24 }
 0x890   :  { %2737 = vmatprep.subr.bf16.mxu1 %v3226_v24 }
 0x893   :  { %2738 = vmatpush3.bf16.msra.mxu1 %v3358_v53 }
 0x894   :  { %2739 = vmatprep.subr.bf16.mxu1 %v3226_v24 }
 0x897   :  { %2740 = vmatpush3.bf16.msra.mxu1 %v3362_v59 }
 0x898   :  { %2741 = vmatprep.subr.bf16.mxu1 %v3226_v24 }
 0x89b   :  { %2742 = vmatpush3.bf16.msra.mxu1 %v3366_v60 }
 0x89c   :  { %2743 = vmatprep.subr.bf16.mxu1 %v3226_v24 }
 0x89f   :  { %2744 = vmatpush3.bf16.msra.mxu1 %v3373_v63 }
 0x8a0   :  { %2745 = vmatprep.subr.bf16.mxu1 %v3226_v24 }
 0x8a3   :  { %2746 = vmatpush3.bf16.msra.mxu1 %v3377_v3 }
 0x8a4   :  { %2747 = vmatprep.subr.bf16.mxu1 %v3226_v24 }
 0x8a7   :  { %2748 = vmatpush3.bf16.msra.mxu1 %v3381_v4 }
 0x8a8   :  { %2749 = vmatprep.subr.bf16.mxu1 %v3226_v24 }
 0x8ab   :  { %2750 = vmatpush3.bf16.msra.mxu1 %v3385_v5 }
 0x8ac   :  { %2755 = vmatprep.subr.bf16.mxu1 %v3226_v24 }
 0x961   :  { %v1245_v16 = vpop.f32.mrb[20].mxu1 }
 0x962   :  { %v3038_v11 = vadd.f32 %v3497_v50, %v1245_v16  ;;  %v2693_v13 = vpop.f32.mrb[21].mxu1 }
 0x963   :  { %v1248_v14 = vpop.f32.mrb[22].mxu1  ;;  %v3983_v13 = vld [vmem:[#allocation2 + $0x108] sm:$0xff]  }
 0x964   :  { %3146 = vtanh.f32 %v3038_v11  ;;  %v2694_v15 = vpop.f32.mrb[23].mxu1  ;;  %v3987_v14 = vld [vmem:[#allocation2 + $0x110] sm:$0xff]  }
 0x965   :  { %v3991_v15 = vld [vmem:[#allocation2 + $0x118] sm:$0xff]  }
 0x96e   :  { %v3147_v17 = vpop.eup %3146 }
 0x96f   :  { %v3752_v12 = vpack.c.bf16 %v3147_v17, %v3147_v17  ;;  %v3995_v17 = vld [vmem:[#allocation2 + $0x120] sm:$0xff]  }
 0x971   :  { %2712 = vmatmul.mubr.bf16.vlgmr.msra.gmra.mrb[36].mxu0 %v3752_v12 }
 0x972   :  { %2716 = vmatpush3.bf16.msra.mxu0 %v3317_v31  ;;  %2731 = vmatprep.mubr.msk.bf16.mxu0 %vm3228_vm12, %v3226_v24 }
 0x973   :  { %2717 = vmatprep.subr.bf16.mxu0 %v3226_v24 }
 0x976   :  { %2718 = vmatpush3.bf16.msra.mxu0 %v3320_v35 }
 0x977   :  { %2719 = vmatprep.subr.bf16.mxu0 %v3226_v24 }
 0x97a   :  { %2720 = vmatpush3.bf16.msra.mxu0 %v3324_v38 }
 0x97b   :  { %2721 = vmatprep.subr.bf16.mxu0 %v3226_v24 }
 0x97e   :  { %2722 = vmatpush3.bf16.msra.mxu0 %v3328_v39 }
 0x97f   :  { %2723 = vmatprep.subr.bf16.mxu0 %v3226_v24 }
 0x982   :  { %2724 = vmatpush3.bf16.msra.mxu0 %v3332_v40 }
 0x983   :  { %2725 = vmatprep.subr.bf16.mxu0 %v3226_v24 }
 0x986   :  { %2726 = vmatpush3.bf16.msra.mxu0 %v3336_v41 }
 0x987   :  { %2727 = vmatprep.subr.bf16.mxu0 %v3226_v24 }
 0x98a   :  { %2728 = vmatpush3.bf16.msra.mxu0 %v3341_v42 }
 0x98b   :  { %2729 = vmatprep.subr.bf16.mxu0 %v3226_v24 }
 0x98e   :  { %2730 = vmatpush3.bf16.msra.mxu0 %v3345_v44 }
 0x98f   :  { %2775 = vmatprep.subr.bf16.mxu0 %v3226_v24 }
 0x991   :  { %2732 = vmatmul.mubr.bf16.vlgmr.msra.gmra.mrb[40].mxu0 %v1170_v10 }
 0x992   :  { %2776 = vmatpush3.bf16.msra.mxu0 %v3389_v6  ;;  %2791 = vmatprep.mubr.msk.bf16.mxu0 %vm3228_vm12, %v3226_v24 }
 0x993   :  { %2777 = vmatprep.subr.bf16.mxu0 %v3226_v24 }
 0x996   :  { %2778 = vmatpush3.bf16.msra.mxu0 %v3392_v7 }
 0x997   :  { %2779 = vmatprep.subr.bf16.mxu0 %v3226_v24 }
 0x99a   :  { %2780 = vmatpush3.bf16.msra.mxu0 %v3396_v8 }
 0x99b   :  { %2781 = vmatprep.subr.bf16.mxu0 %v3226_v24 }
 0x99e   :  { %2782 = vmatpush3.bf16.msra.mxu0 %v3400_v9 }
 0x99f   :  { %2783 = vmatprep.subr.bf16.mxu0 %v3226_v24 }
 0x9a2   :  { %2784 = vmatpush3.bf16.msra.mxu0 %v3478_v0 }
 0x9a3   :  { %2785 = vmatprep.subr.bf16.mxu0 %v3226_v24 }
 0x9a6   :  { %2786 = vmatpush3.bf16.msra.mxu0 %v3482_v47 }
 0x9a7   :  { %2787 = vmatprep.subr.bf16.mxu0 %v3226_v24 }
 0x9aa   :  { %2788 = vmatpush3.bf16.msra.mxu0 %v3486_v48 }
 0x9ab   :  { %2789 = vmatprep.subr.bf16.mxu0 %v3226_v24 }
 0x9ae   :  { %2790 = vmatpush3.bf16.msra.mxu0 %v3490_v49 }
 0x9af   :  { %2795 = vmatprep.subr.bf16.mxu0 %v3226_v24 }
 0xa44   :  { %v1288_v31 = vpop.f32.mrb[36].mxu0 }
 0xa45   :  { %v1289_v35 = vadd.f32 %v3543_v62, %v1288_v31  ;;  %v2713_v38 = vpop.f32.mrb[37].mxu0  ;;  %v4003_v31 = vld [vmem:[#allocation2 + $0x130] sm:$0xff]  }
 0xa46   :  { %v1291_v39 = vpop.f32.mrb[38].mxu0 }
 0xa47   :  { %1294 = vst [vmem:[%s4150_s4 + $0x18] sm:$0xff] %v1289_v35  ;;  %v2714_v40 = vpop.f32.mrb[39].mxu0  ;;  %v4007_v35 = vld [vmem:[#allocation2 + $0x138] sm:$0xff]  }
 0xa64   :  { %v1329_v41 = vpop.f32.mrb[40].mxu0 }
 0xa65   :  { %v1335_v42 = vadd.f32 %v1329_v41, %v3416_v23  ;;  %v2733_v44 = vpop.f32.mrb[41].mxu0 }
 0xa66   :  { %v1332_v18 = vpop.f32.mrb[42].mxu0 }
 0xa67   :  { %3148 = vtanh.f32 %v1335_v42  ;;  %v2734_v20 = vpop.f32.mrb[43].mxu0 }
 0xa71   :  { %v3149_v22 = vpop.eup %3148 }
 0xa72   :  { %v3796_v25 = vpack.c.bf16 %v3149_v22, %v3149_v22 }
 0xa74   :  { %2752 = vmatmul.mubr.bf16.vlgmr.msra.gmra.mrb[24].mxu1 %v3796_v25 }
 0xa75   :  { %2756 = vmatpush3.bf16.msra.mxu1 %v3422_v30  ;;  %2771 = vmatprep.mubr.msk.bf16.mxu1 %vm3228_vm12, %v3226_v24 }
 0xa76   :  { %2757 = vmatprep.subr.bf16.mxu1 %v3226_v24 }
 0xa79   :  { %2758 = vmatpush3.bf16.msra.mxu1 %v3428_v33 }
 0xa7a   :  { %2759 = vmatprep.subr.bf16.mxu1 %v3226_v24 }
 0xa7d   :  { %2760 = vmatpush3.bf16.msra.mxu1 %v3434_v34 }
 0xa7e   :  { %2761 = vmatprep.subr.bf16.mxu1 %v3226_v24 }
 0xa81   :  { %2762 = vmatpush3.bf16.msra.mxu1 %v3438_v36 }
 0xa82   :  { %2763 = vmatprep.subr.bf16.mxu1 %v3226_v24 }
 0xa85   :  { %2764 = vmatpush3.bf16.msra.mxu1 %v3442_v37 }
 0xa86   :  { %2765 = vmatprep.subr.bf16.mxu1 %v3226_v24 }
 0xa89   :  { %2766 = vmatpush3.bf16.msra.mxu1 %v3446_v43 }
 0xa8a   :  { %2767 = vmatprep.subr.bf16.mxu1 %v3226_v24 }
 0xa8d   :  { %2768 = vmatpush3.bf16.msra.mxu1 %v3450_v45 }
 0xa8e   :  { %2769 = vmatprep.subr.bf16.mxu1 %v3226_v24 }
 0xa91   :  { %2770 = vmatpush3.bf16.msra.mxu1 %v3454_v46 }
 0xa92   :  { %2815 = vmatprep.subr.bf16.mxu1 %v3226_v24 }
 0xa94   :  { %2772 = vmatmul.mubr.bf16.vlgmr.msra.gmra.mrb[24].mxu1 %v3752_v12  ;;  %v3999_v12 = vld [vmem:[#allocation2 + $0x128] sm:$0xff]  }
 0xa95   :  { %2816 = vmatpush3.bf16.msra.mxu1 %v3355_v51  ;;  %2831 = vmatprep.mubr.msk.bf16.mxu1 %vm3228_vm12, %v3226_v24 }
 0xa96   :  { %2817 = vmatprep.subr.bf16.mxu1 %v3226_v24 }
 0xa99   :  { %2818 = vmatpush3.bf16.msra.mxu1 %v3358_v53 }
 0xa9a   :  { %2819 = vmatprep.subr.bf16.mxu1 %v3226_v24 }
 0xa9d   :  { %2820 = vmatpush3.bf16.msra.mxu1 %v3362_v59 }
 0xa9e   :  { %2821 = vmatprep.subr.bf16.mxu1 %v3226_v24 }
 0xaa1   :  { %2822 = vmatpush3.bf16.msra.mxu1 %v3366_v60 }
 0xaa2   :  { %2823 = vmatprep.subr.bf16.mxu1 %v3226_v24 }
 0xaa5   :  { %2824 = vmatpush3.bf16.msra.mxu1 %v3373_v63 }
 0xaa6   :  { %2825 = vmatprep.subr.bf16.mxu1 %v3226_v24 }
 0xaa9   :  { %2826 = vmatpush3.bf16.msra.mxu1 %v3377_v3  ;;  %v3840_v3 = vld [vmem:[#allocation2 + $0x40] sm:$0xff]  }
 0xaaa   :  { %2827 = vmatprep.subr.bf16.mxu1 %v3226_v24 }
 0xaad   :  { %2828 = vmatpush3.bf16.msra.mxu1 %v3381_v4  ;;  %v3846_v4 = vld [vmem:[#allocation2 + $0x48] sm:$0xff]  }
 0xaae   :  { %2829 = vmatprep.subr.bf16.mxu1 %v3226_v24 }
 0xab1   :  { %2830 = vmatpush3.bf16.msra.mxu1 %v3385_v5  ;;  %v3850_v5 = vld [vmem:[#allocation2 + $0x50] sm:$0xff]  }
 0xab2   :  { %2835 = vmatprep.subr.bf16.mxu1 %v3226_v24 }
 0xb67   :  { %v1412_v51 = vpop.f32.mrb[24].mxu1 }
 0xb68   :  { %v3039_v53 = vadd.f32 %v3497_v50, %v1412_v51  ;;  %v2773_v59 = vpop.f32.mrb[25].mxu1 }
 0xb69   :  { %v1415_v60 = vpop.f32.mrb[26].mxu1  ;;  %v4025_v59 = vld [vmem:[#allocation2 + $0xc8] sm:$0xff]  }
 0xb6a   :  { %3150 = vtanh.f32 %v3039_v53  ;;  %v2774_v63 = vpop.f32.mrb[27].mxu1  ;;  %v4033_v60 = vld [vmem:[#allocation2 + $0xd8] sm:$0xff]  }
 0xb6b   :  { %v4037_v63 = vld [vmem:[#allocation2 + $0xe0] sm:$0xff]  }
 0xb74   :  { %v3151_v23 = vpop.eup %3150 }
 0xb75   :  { %v3837_v19 = vpack.c.bf16 %v3151_v23, %v3151_v23  ;;  %v4041_v23 = vld [vmem:[#allocation2 + $0xe8] sm:$0xff]  }
 0xb77   :  { %2792 = vmatmul.mubr.bf16.vlgmr.msra.gmra.mrb[44].mxu0 %v3837_v19 }
 0xb78   :  { %2796 = vmatpush3.bf16.msra.mxu0 %v3840_v3  ;;  %2811 = vmatprep.mubr.msk.bf16.mxu0 %vm3228_vm12, %v3226_v24 }
 0xb79   :  { %2797 = vmatprep.subr.bf16.mxu0 %v3226_v24 }
 0xb7c   :  { %2798 = vmatpush3.bf16.msra.mxu0 %v3846_v4 }
 0xb7d   :  { %2799 = vmatprep.subr.bf16.mxu0 %v3226_v24 }
 0xb80   :  { %2800 = vmatpush3.bf16.msra.mxu0 %v3850_v5 }
 0xb81   :  { %2801 = vmatprep.subr.bf16.mxu0 %v3226_v24 }
 0xb84   :  { %2802 = vmatpush3.bf16.msra.mxu0 %v3854_v27 }
 0xb85   :  { %2803 = vmatprep.subr.bf16.mxu0 %v3226_v24 }
 0xb88   :  { %2804 = vmatpush3.bf16.msra.mxu0 %v3858_v29 }
 0xb89   :  { %2805 = vmatprep.subr.bf16.mxu0 %v3226_v24 }
 0xb8c   :  { %2806 = vmatpush3.bf16.msra.mxu0 %v3862_v32 }
 0xb8d   :  { %2807 = vmatprep.subr.bf16.mxu0 %v3226_v24 }
 0xb90   :  { %2808 = vmatpush3.bf16.msra.mxu0 %v3866_v52 }
 0xb91   :  { %2809 = vmatprep.subr.bf16.mxu0 %v3226_v24 }
 0xb94   :  { %2810 = vmatpush3.bf16.msra.mxu0 %v3870_v54 }
 0xb95   :  { %2855 = vmatprep.subr.bf16.mxu0 %v3226_v24 }
 0xb97   :  { %2812 = vmatmul.mubr.bf16.vlgmr.msra.gmra.mrb[48].mxu0 %v3796_v25 }
 0xb98   :  { %2856 = vmatpush3.bf16.msra.mxu0 %v3389_v6  ;;  %2871 = vmatprep.mubr.msk.bf16.mxu0 %vm3228_vm12, %v3226_v24 }
 0xb99   :  { %2857 = vmatprep.subr.bf16.mxu0 %v3226_v24 }
 0xb9c   :  { %2858 = vmatpush3.bf16.msra.mxu0 %v3392_v7 }
 0xb9d   :  { %2859 = vmatprep.subr.bf16.mxu0 %v3226_v24 }
 0xba0   :  { %2860 = vmatpush3.bf16.msra.mxu0 %v3396_v8 }
 0xba1   :  { %2861 = vmatprep.subr.bf16.mxu0 %v3226_v24 }
 0xba4   :  { %2862 = vmatpush3.bf16.msra.mxu0 %v3400_v9 }
 0xba5   :  { %2863 = vmatprep.subr.bf16.mxu0 %v3226_v24 }
 0xba8   :  { %2864 = vmatpush3.bf16.msra.mxu0 %v3478_v0 }
 0xba9   :  { %2865 = vmatprep.subr.bf16.mxu0 %v3226_v24 }
 0xbac   :  { %2866 = vmatpush3.bf16.msra.mxu0 %v3482_v47 }
 0xbad   :  { %2867 = vmatprep.subr.bf16.mxu0 %v3226_v24 }
 0xbb0   :  { %2868 = vmatpush3.bf16.msra.mxu0 %v3486_v48 }
 0xbb1   :  { %2869 = vmatprep.subr.bf16.mxu0 %v3226_v24 }
 0xbb4   :  { %2870 = vmatpush3.bf16.msra.mxu0 %v3490_v49 }
 0xbb5   :  { %2875 = vmatprep.subr.bf16.mxu0 %v3226_v24 }
 0xc4a   :  { %v1455_v6 = vpop.f32.mrb[44].mxu0 }
 0xc4b   :  { %v1456_v7 = vadd.f32 %v3543_v62, %v1455_v6  ;;  %v2793_v8 = vpop.f32.mrb[45].mxu0  ;;  %v4049_v6 = vld [vmem:[#allocation2 + $0xf8] sm:$0xff]  }
 0xc4c   :  { %v1458_v9 = vpop.f32.mrb[46].mxu0  ;;  %v4075_v8 = vld [vmem:[%s4149_s3 + $0x8] ss:$0 sm:$0xff] }
 0xc4d   :  { %1461 = vst [vmem:[%s4150_s4 + $0x20] sm:$0xff] %v1456_v7  ;;  %v2794_v0 = vpop.f32.mrb[47].mxu0 }
 0xc6a   :  { %v1496_v47 = vpop.f32.mrb[48].mxu0 }
 0xc6b   :  { %v1502_v55 = vadd.f32 %v1496_v47, %v3420_v28  ;;  %v2813_v48 = vpop.f32.mrb[49].mxu0  ;;  %v3920_v28 = vld [vmem:[#allocation2 + $0x80] sm:$0xff]  }
 0xc6c   :  { %v1499_v56 = vpop.f32.mrb[50].mxu0 }
 0xc6d   :  { %3152 = vtanh.f32 %v1502_v55  ;;  %v2814_v57 = vpop.f32.mrb[51].mxu0 }
 0xc77   :  { %v3153_v49 = vpop.eup %3152 }
 0xc78   :  { %v3898_v58 = vpack.c.bf16 %v3153_v49, %v3153_v49 }
 0xc7a   :  { %2832 = vmatmul.mubr.bf16.vlgmr.msra.gmra.mrb[28].mxu1 %v3898_v58 }
 0xc7b   :  { %2836 = vmatpush3.bf16.msra.mxu1 %v3422_v30  ;;  %2851 = vmatprep.mubr.msk.bf16.mxu1 %vm3228_vm12, %v3226_v24  ;;  %v3926_v30 = vld [vmem:[#allocation2 + $0x88] sm:$0xff]  }
 0xc7c   :  { %2837 = vmatprep.subr.bf16.mxu1 %v3226_v24 }
 0xc7f   :  { %2838 = vmatpush3.bf16.msra.mxu1 %v3428_v33  ;;  %v3930_v33 = vld [vmem:[#allocation2 + $0x90] sm:$0xff]  }
 0xc80   :  { %2839 = vmatprep.subr.bf16.mxu1 %v3226_v24 }
 0xc83   :  { %2840 = vmatpush3.bf16.msra.mxu1 %v3434_v34  ;;  %v3934_v34 = vld [vmem:[#allocation2 + $0x98] sm:$0xff]  }
 0xc84   :  { %2841 = vmatprep.subr.bf16.mxu1 %v3226_v24 }
 0xc87   :  { %2842 = vmatpush3.bf16.msra.mxu1 %v3438_v36  ;;  %v3938_v36 = vld [vmem:[#allocation2 + $0xa0] sm:$0xff]  }
 0xc88   :  { %2843 = vmatprep.subr.bf16.mxu1 %v3226_v24 }
 0xc8b   :  { %2844 = vmatpush3.bf16.msra.mxu1 %v3442_v37  ;;  %v3942_v37 = vld [vmem:[#allocation2 + $0xa8] sm:$0xff]  }
 0xc8c   :  { %2845 = vmatprep.subr.bf16.mxu1 %v3226_v24 }
 0xc8f   :  { %2846 = vmatpush3.bf16.msra.mxu1 %v3446_v43  ;;  %v3946_v43 = vld [vmem:[#allocation2 + $0xb0] sm:$0xff]  }
 0xc90   :  { %2847 = vmatprep.subr.bf16.mxu1 %v3226_v24 }
 0xc93   :  { %2848 = vmatpush3.bf16.msra.mxu1 %v3450_v45  ;;  %v3950_v45 = vld [vmem:[#allocation2 + $0xb8] sm:$0xff]  }
 0xc94   :  { %2849 = vmatprep.subr.bf16.mxu1 %v3226_v24 }
 0xc97   :  { %2850 = vmatpush3.bf16.msra.mxu1 %v3454_v46 }
 0xc98   :  { %2895 = vmatprep.subr.bf16.mxu1 %v3226_v24 }
 0xc9a   :  { %2852 = vmatmul.mubr.bf16.vlgmr.msra.gmra.mrb[28].mxu1 %v3837_v19  ;;  %v4045_v19 = vld [vmem:[#allocation2 + $0xf0] sm:$0xff]  }
 0xc9b   :  { %2896 = vmatpush3.bf16.msra.mxu1 %v3920_v28  ;;  %2911 = vmatprep.mubr.msk.bf16.mxu1 %vm3228_vm12, %v3226_v24 }
 0xc9c   :  { %2897 = vmatprep.subr.bf16.mxu1 %v3226_v24 }
 0xc9f   :  { %2898 = vmatpush3.bf16.msra.mxu1 %v3926_v30 }
 0xca0   :  { %2899 = vmatprep.subr.bf16.mxu1 %v3226_v24 }
 0xca3   :  { %2900 = vmatpush3.bf16.msra.mxu1 %v3930_v33 }
 0xca4   :  { %2901 = vmatprep.subr.bf16.mxu1 %v3226_v24 }
 0xca7   :  { %2902 = vmatpush3.bf16.msra.mxu1 %v3934_v34 }
 0xca8   :  { %2903 = vmatprep.subr.bf16.mxu1 %v3226_v24 }
 0xcab   :  { %2904 = vmatpush3.bf16.msra.mxu1 %v3938_v36 }
 0xcac   :  { %2905 = vmatprep.subr.bf16.mxu1 %v3226_v24 }
 0xcaf   :  { %2906 = vmatpush3.bf16.msra.mxu1 %v3942_v37 }
 0xcb0   :  { %2907 = vmatprep.subr.bf16.mxu1 %v3226_v24 }
 0xcb3   :  { %2908 = vmatpush3.bf16.msra.mxu1 %v3946_v43 }
 0xcb4   :  { %2909 = vmatprep.subr.bf16.mxu1 %v3226_v24 }
 0xcb7   :  { %2910 = vmatpush3.bf16.msra.mxu1 %v3950_v45 }
 0xcb8   :  { %2915 = vmatprep.subr.bf16.mxu1 %v3226_v24 }
 0xd6d   :  { %v1579_v46 = vpop.f32.mrb[28].mxu1 }
 0xd6e   :  { %v3040_v61 = vadd.f32 %v3497_v50, %v1579_v46  ;;  %v2853_v1 = vpop.f32.mrb[29].mxu1  ;;  %v3977_v50 = vld [vmem:[#allocation2 + $0x100] sm:$0xff]  }
 0xd6f   :  { %v1582_v2 = vpop.f32.mrb[30].mxu1 }
 0xd70   :  { %3154 = vtanh.f32 %v3040_v61  ;;  %v2854_v10 = vpop.f32.mrb[31].mxu1 }
 0xd7a   :  { %v3155_v16 = vpop.eup %3154 }
 0xd7b   :  { %v3955_v11 = vpack.c.bf16 %v3155_v16, %v3155_v16 }
 0xd7d   :  { %2872 = vmatmul.mubr.bf16.vlgmr.msra.gmra.mrb[52].mxu0 %v3955_v11 }
 0xd7e   :  { %2876 = vmatpush3.bf16.msra.mxu0 %v3840_v3  ;;  %2891 = vmatprep.mubr.msk.bf16.mxu0 %vm3228_vm12, %v3226_v24 }
 0xd7f   :  { %2877 = vmatprep.subr.bf16.mxu0 %v3226_v24 }
 0xd82   :  { %2878 = vmatpush3.bf16.msra.mxu0 %v3846_v4 }
 0xd83   :  { %2879 = vmatprep.subr.bf16.mxu0 %v3226_v24 }
 0xd86   :  { %2880 = vmatpush3.bf16.msra.mxu0 %v3850_v5 }
 0xd87   :  { %2881 = vmatprep.subr.bf16.mxu0 %v3226_v24 }
 0xd8a   :  { %2882 = vmatpush3.bf16.msra.mxu0 %v3854_v27 }
 0xd8b   :  { %2883 = vmatprep.subr.bf16.mxu0 %v3226_v24 }
 0xd8e   :  { %2884 = vmatpush3.bf16.msra.mxu0 %v3858_v29 }
 0xd8f   :  { %2885 = vmatprep.subr.bf16.mxu0 %v3226_v24 }
 0xd92   :  { %2886 = vmatpush3.bf16.msra.mxu0 %v3862_v32 }
 0xd93   :  { %2887 = vmatprep.subr.bf16.mxu0 %v3226_v24 }
 0xd96   :  { %2888 = vmatpush3.bf16.msra.mxu0 %v3866_v52 }
 0xd97   :  { %2889 = vmatprep.subr.bf16.mxu0 %v3226_v24 }
 0xd9a   :  { %2890 = vmatpush3.bf16.msra.mxu0 %v3870_v54 }
 0xd9b   :  { %2935 = vmatprep.subr.bf16.mxu0 %v3226_v24 }
 0xd9d   :  { %2892 = vmatmul.mubr.bf16.vlgmr.msra.gmra.mrb[56].mxu0 %v3898_v58 }
 0xd9e   :  { %2936 = vmatpush3.bf16.msra.mxu0 %v3977_v50  ;;  %2951 = vmatprep.mubr.msk.bf16.mxu0 %vm3228_vm12, %v3226_v24 }
 0xd9f   :  { %2937 = vmatprep.subr.bf16.mxu0 %v3226_v24 }
 0xda2   :  { %2938 = vmatpush3.bf16.msra.mxu0 %v3983_v13 }
 0xda3   :  { %2939 = vmatprep.subr.bf16.mxu0 %v3226_v24 }
 0xda6   :  { %2940 = vmatpush3.bf16.msra.mxu0 %v3987_v14 }
 0xda7   :  { %2941 = vmatprep.subr.bf16.mxu0 %v3226_v24 }
 0xdaa   :  { %2942 = vmatpush3.bf16.msra.mxu0 %v3991_v15 }
 0xdab   :  { %2943 = vmatprep.subr.bf16.mxu0 %v3226_v24 }
 0xdae   :  { %2944 = vmatpush3.bf16.msra.mxu0 %v3995_v17 }
 0xdaf   :  { %2945 = vmatprep.subr.bf16.mxu0 %v3226_v24 }
 0xdb2   :  { %2946 = vmatpush3.bf16.msra.mxu0 %v3999_v12 }
 0xdb3   :  { %2947 = vmatprep.subr.bf16.mxu0 %v3226_v24 }
 0xdb6   :  { %2948 = vmatpush3.bf16.msra.mxu0 %v4003_v31 }
 0xdb7   :  { %2949 = vmatprep.subr.bf16.mxu0 %v3226_v24 }
 0xdba   :  { %2950 = vmatpush3.bf16.msra.mxu0 %v4007_v35 }
 0xdbb   :  { %2955 = vmatprep.subr.bf16.mxu0 %v3226_v24 }
 0xe50   :  { %v1622_v38 = vpop.f32.mrb[52].mxu0 }
 0xe51   :  { %v1623_v39 = vadd.f32 %v3543_v62, %v1622_v38  ;;  %v2873_v40 = vpop.f32.mrb[53].mxu0  ;;  %v4019_v62 = vld [vmem:[#allocation2 + $0xc0] sm:$0xff]  }
 0xe52   :  { %v1625_v41 = vpop.f32.mrb[54].mxu0 }
 0xe53   :  { %1628 = vst [vmem:[%s4150_s4 + $0x28] sm:$0xff] %v1623_v39  ;;  %v2874_v42 = vpop.f32.mrb[55].mxu0 }
 0xe70   :  { %v1663_v44 = vpop.f32.mrb[56].mxu0 }
 0xe71   :  { %v1669_v18 = vadd.f32 %v1663_v44, %v3414_v21  ;;  %v2893_v20 = vpop.f32.mrb[57].mxu0  ;;  %v4029_v21 = vld [vmem:[#allocation2 + $0xd0] sm:$0xff]  }
 0xe72   :  { %v1666_v22 = vpop.f32.mrb[58].mxu0 }
 0xe73   :  { %3156 = vtanh.f32 %v1669_v18  ;;  %v2894_v25 = vpop.f32.mrb[59].mxu0 }
 0xe7d   :  { %v3157_v51 = vpop.eup %3156 }
 0xe7e   :  { %v4016_v53 = vpack.c.bf16 %v3157_v51, %v3157_v51 }
 0xe80   :  { %2912 = vmatmul.mubr.bf16.vlgmr.msra.gmra.mrb[32].mxu1 %v4016_v53 }
 0xe81   :  { %2916 = vmatpush3.bf16.msra.mxu1 %v4019_v62  ;;  %2931 = vmatprep.mubr.msk.bf16.mxu1 %vm3228_vm12, %v3226_v24 }
 0xe82   :  { %2917 = vmatprep.subr.bf16.mxu1 %v3226_v24 }
 0xe85   :  { %2918 = vmatpush3.bf16.msra.mxu1 %v4025_v59 }
 0xe86   :  { %2919 = vmatprep.subr.bf16.mxu1 %v3226_v24 }
 0xe89   :  { %2920 = vmatpush3.bf16.msra.mxu1 %v4029_v21 }
 0xe8a   :  { %2921 = vmatprep.subr.bf16.mxu1 %v3226_v24 }
 0xe8d   :  { %2922 = vmatpush3.bf16.msra.mxu1 %v4033_v60 }
 0xe8e   :  { %2923 = vmatprep.subr.bf16.mxu1 %v3226_v24 }
 0xe91   :  { %2924 = vmatpush3.bf16.msra.mxu1 %v4037_v63 }
 0xe92   :  { %2925 = vmatprep.subr.bf16.mxu1 %v3226_v24 }
 0xe95   :  { %2926 = vmatpush3.bf16.msra.mxu1 %v4041_v23 }
 0xe96   :  { %2927 = vmatprep.subr.bf16.mxu1 %v3226_v24 }
 0xe99   :  { %2928 = vmatpush3.bf16.msra.mxu1 %v4045_v19 }
 0xe9a   :  { %2929 = vmatprep.subr.bf16.mxu1 %v3226_v24 }
 0xe9d   :  { %2930 = vmatpush3.bf16.msra.mxu1 %v4049_v6 }
 0xe9e   :  { %2975 = vmatprep.subr.bf16.mxu1 %v3226_v24 }
 0xea0   :  { %2932 = vmatmul.mubr.bf16.vlgmr.msra.gmra.mrb[32].mxu1 %v3955_v11 }
 0xea1   :  { %2976 = vmatpush3.bf16.msra.mxu1 %v3920_v28  ;;  %2991 = vmatprep.mubr.msk.bf16.mxu1 %vm3228_vm12, %v3226_v24 }
 0xea2   :  { %2977 = vmatprep.subr.bf16.mxu1 %v3226_v24 }
 0xea5   :  { %2978 = vmatpush3.bf16.msra.mxu1 %v3926_v30 }
 0xea6   :  { %2979 = vmatprep.subr.bf16.mxu1 %v3226_v24 }
 0xea9   :  { %2980 = vmatpush3.bf16.msra.mxu1 %v3930_v33 }
 0xeaa   :  { %2981 = vmatprep.subr.bf16.mxu1 %v3226_v24 }
 0xead   :  { %2982 = vmatpush3.bf16.msra.mxu1 %v3934_v34 }
 0xeae   :  { %2983 = vmatprep.subr.bf16.mxu1 %v3226_v24 }
 0xeb1   :  { %2984 = vmatpush3.bf16.msra.mxu1 %v3938_v36 }
 0xeb2   :  { %2985 = vmatprep.subr.bf16.mxu1 %v3226_v24 }
 0xeb5   :  { %2986 = vmatpush3.bf16.msra.mxu1 %v3942_v37 }
 0xeb6   :  { %2987 = vmatprep.subr.bf16.mxu1 %v3226_v24 }
 0xeb9   :  { %2988 = vmatpush3.bf16.msra.mxu1 %v3946_v43 }
 0xeba   :  { %2989 = vmatprep.subr.bf16.mxu1 %v3226_v24 }
 0xebd   :  { %2990 = vmatpush3.bf16.msra.mxu1 %v3950_v45 }
 0xebe   :  { %2995 = vmatprep.subr.bf16.mxu1 %v3226_v24 }
 0xf73   :  { %v1746_v7 = vpop.f32.mrb[32].mxu1 }
 0xf74   :  { %v3041_v9 = vadd.f32 %v4075_v8, %v1746_v7  ;;  %v2933_v0 = vpop.f32.mrb[33].mxu1 }
 0xf75   :  { %v1749_v47 = vpop.f32.mrb[34].mxu1 }
 0xf76   :  { %3158 = vtanh.f32 %v3041_v9  ;;  %v2934_v55 = vpop.f32.mrb[35].mxu1 }
 0xf80   :  { %v3159_v48 = vpop.eup %3158 }
 0xf81   :  { %v4078_v56 = vpack.c.bf16 %v3159_v48, %v3159_v48 }
 0xf83   :  { %2952 = vmatmul.mubr.bf16.vlgmr.msra.gmra.mrb[60].mxu0 %v4078_v56 }
 0xf84   :  { %2956 = vmatpush3.bf16.msra.mxu0 %v3840_v3  ;;  %2971 = vmatprep.mubr.msk.bf16.mxu0 %vm3228_vm12, %v3226_v24 }
 0xf85   :  { %2957 = vmatprep.subr.bf16.mxu0 %v3226_v24 }
 0xf88   :  { %2958 = vmatpush3.bf16.msra.mxu0 %v3846_v4  ;;  %v3197_v4 = vld [vmem:[%s4149_s3 + $0x10] ss:$0 sm:$0xff] }
 0xf89   :  { %2959 = vmatprep.subr.bf16.mxu0 %v3226_v24 }
 0xf8c   :  { %2960 = vmatpush3.bf16.msra.mxu0 %v3850_v5 }
 0xf8d   :  { %2961 = vmatprep.subr.bf16.mxu0 %v3226_v24 }
 0xf90   :  { %2962 = vmatpush3.bf16.msra.mxu0 %v3854_v27 }
 0xf91   :  { %2963 = vmatprep.subr.bf16.mxu0 %v3226_v24 }
 0xf94   :  { %2964 = vmatpush3.bf16.msra.mxu0 %v3858_v29 }
 0xf95   :  { %2965 = vmatprep.subr.bf16.mxu0 %v3226_v24 }
 0xf98   :  { %2966 = vmatpush3.bf16.msra.mxu0 %v3862_v32 }
 0xf99   :  { %2967 = vmatprep.subr.bf16.mxu0 %v3226_v24 }
 0xf9c   :  { %2968 = vmatpush3.bf16.msra.mxu0 %v3866_v52 }
 0xf9d   :  { %2969 = vmatprep.subr.bf16.mxu0 %v3226_v24 }
 0xfa0   :  { %2970 = vmatpush3.bf16.msra.mxu0 %v3870_v54 }
 0xfa1   :  { %3015 = vmatprep.subr.bf16.mxu0 %v3226_v24 }
 0xfa3   :  { %2972 = vmatmul.mubr.bf16.vlgmr.msra.gmra.mrb[64].mxu0 %v4016_v53 }
 0xfa4   :  { %3016 = vmatpush3.bf16.msra.mxu0 %v3977_v50  ;;  %3031 = vmatprep.mubr.msk.bf16.mxu0 %vm3228_vm12, %v3226_v24 }
 0xfa5   :  { %3017 = vmatprep.subr.bf16.mxu0 %v3226_v24 }
 0xfa8   :  { %3018 = vmatpush3.bf16.msra.mxu0 %v3983_v13 }
 0xfa9   :  { %3019 = vmatprep.subr.bf16.mxu0 %v3226_v24 }
 0xfac   :  { %3020 = vmatpush3.bf16.msra.mxu0 %v3987_v14 }
 0xfad   :  { %3021 = vmatprep.subr.bf16.mxu0 %v3226_v24 }
 0xfb0   :  { %3022 = vmatpush3.bf16.msra.mxu0 %v3991_v15 }
 0xfb1   :  { %3023 = vmatprep.subr.bf16.mxu0 %v3226_v24 }
 0xfb4   :  { %3024 = vmatpush3.bf16.msra.mxu0 %v3995_v17 }
 0xfb5   :  { %3025 = vmatprep.subr.bf16.mxu0 %v3226_v24 }
 0xfb8   :  { %3026 = vmatpush3.bf16.msra.mxu0 %v3999_v12 }
 0xfb9   :  { %3027 = vmatprep.subr.bf16.mxu0 %v3226_v24 }
 0xfbc   :  { %3028 = vmatpush3.bf16.msra.mxu0 %v4003_v31 }
 0xfbd   :  { %3029 = vmatprep.subr.bf16.mxu0 %v3226_v24 }
 0xfc0   :  { %3030 = vmatpush3.bf16.msra.mxu0 %v4007_v35 }
0x1056   :  { %v1789_v3 = vpop.f32.mrb[60].mxu0 }
0x1057   :  { %v1790_v5 = vadd.f32 %v3197_v4, %v1789_v3  ;;  %v2953_v27 = vpop.f32.mrb[61].mxu0 }
0x1058   :  { %v1792_v29 = vpop.f32.mrb[62].mxu0 }
0x1059   :  { %1795 = vst [vmem:[%s4150_s4 + $0x30] sm:$0xff] %v1790_v5  ;;  %v2954_v32 = vpop.f32.mrb[63].mxu0 }
0x1076   :  { %v1830_v52 = vpop.f32.mrb[64].mxu0 }
0x1077   :  { %v1836_v54 = vadd.f32 %v1830_v52, %v3418_v26  ;;  %v2973_v57 = vpop.f32.mrb[65].mxu0 }
0x1078   :  { %v1833_v49 = vpop.f32.mrb[66].mxu0 }
0x1079   :  { %3160 = vtanh.f32 %v1836_v54  ;;  %v2974_v58 = vpop.f32.mrb[67].mxu0 }
0x1083   :  { %v3161_v28 = vpop.eup %3160 }
0x1084   :  { %v1838_v30 = vpack.c.bf16 %v3161_v28, %v3161_v28 }
0x1086   :  { %2992 = vmatmul.mubr.bf16.vlgmr.msra.gmra.mrb[36].mxu1 %v1838_v30 }
0x1087   :  { %2996 = vmatpush3.bf16.msra.mxu1 %v4019_v62  ;;  %3011 = vmatprep.mubr.msk.bf16.mxu1 %vm3228_vm12, %v3226_v24 }
0x1088   :  { %2997 = vmatprep.subr.bf16.mxu1 %v3226_v24 }
0x108b   :  { %2998 = vmatpush3.bf16.msra.mxu1 %v4025_v59 }
0x108c   :  { %2999 = vmatprep.subr.bf16.mxu1 %v3226_v24 }
0x108f   :  { %3000 = vmatpush3.bf16.msra.mxu1 %v4029_v21 }
0x1090   :  { %3001 = vmatprep.subr.bf16.mxu1 %v3226_v24 }
0x1093   :  { %3002 = vmatpush3.bf16.msra.mxu1 %v4033_v60 }
0x1094   :  { %3003 = vmatprep.subr.bf16.mxu1 %v3226_v24 }
0x1097   :  { %3004 = vmatpush3.bf16.msra.mxu1 %v4037_v63 }
0x1098   :  { %3005 = vmatprep.subr.bf16.mxu1 %v3226_v24 }
0x109b   :  { %3006 = vmatpush3.bf16.msra.mxu1 %v4041_v23 }
0x109c   :  { %3007 = vmatprep.subr.bf16.mxu1 %v3226_v24 }
0x109f   :  { %3008 = vmatpush3.bf16.msra.mxu1 %v4045_v19 }
0x10a0   :  { %3009 = vmatprep.subr.bf16.mxu1 %v3226_v24 }
0x10a3   :  { %3010 = vmatpush3.bf16.msra.mxu1 %v4049_v6 }
0x10a6   :  { %3012 = vmatmul.mubr.bf16.vlgmr.msra.gmra.mrb[36].mxu1 %v4078_v56 }
0x1179   :  { %v1913_v26 = vpop.f32.mrb[36].mxu1 }
0x117a   :  { %v3042_v33 = vadd.f32 %v4075_v8, %v1913_v26  ;;  %v3013_v34 = vpop.f32.mrb[37].mxu1 }
0x117b   :  { %v1916_v36 = vpop.f32.mrb[38].mxu1 }
0x117c   :  { %3162 = vtanh.f32 %v3042_v33  ;;  %v3014_v37 = vpop.f32.mrb[39].mxu1 }
0x1186   :  { %v3163_v43 = vpop.eup %3162 }
0x1187   :  { %v1921_v45 = vpack.c.bf16 %v3163_v43, %v3163_v43 }
0x1189   :  { %3032 = vmatmul.mubr.bf16.vlgmr.msra.gmra.mrb[68].mxu0 %v1921_v45 }
0x125c   :  { %v1956_v46 = vpop.f32.mrb[68].mxu0 }
0x125d   :  { %v1957_v61 = vadd.f32 %v3197_v4, %v1956_v46  ;;  %v3033_v1 = vpop.f32.mrb[69].mxu0 }
0x125e   :  { %v1959_v2 = vpop.f32.mrb[70].mxu0 }
0x125f   :  { %1962 = vst [vmem:[%s4150_s4 + $0x38] sm:$0xff] %v1957_v61  ;;  %v3034_v24 = vpop.f32.mrb[71].mxu0 }
0x1260   :  { %1967 = vsyncpa [#allocation3], 1 }

</bundles_post_ra>
